<compile_context>
chip_gen: v7x
topology: tpu7x:2x2x1
jax: 0.10.0
libtpu: 0.0.40
codegen_flags: <defaults>
</compile_context>

<pallas_src>
import jax
import jax.numpy as jnp
import numpy as np
from jax import lax
from jax.experimental import pallas as pl
from jax.experimental.pallas import tpu as pltpu

EPS = 1e-5
POOL = 64   # nn.AvgPool1d(64): kernel=64, stride=64
KCONV = 3   # Conv1d kernel size


# ---------------------------------------------------------------------------
# Fused forward kernel (single invocation, no grid — everything fits in VMEM)
# ---------------------------------------------------------------------------
def cnn_lstm_kernel(xcol_ref, wc_ref, bc_ref, s1_ref, t1_ref,
                    wih1_ref, whh1_ref, b1_ref, s2_ref, t2_ref,
                    wih2_ref, whh2_ref, b2_ref, s3_ref, t3_ref,
                    wd_ref, bd_ref, out_ref):
    N = out_ref.shape[0]
    NP = xcol_ref.shape[0]
    P = NP // N                       # == POOL
    C1 = wc_ref.shape[1]              # conv out channels (64)
    H1 = whh1_ref.shape[0]            # 128
    H2 = whh2_ref.shape[0]            # 80

    # --- Conv1d (im2col matmul, whole batch) + bias + ReLU + BN1(folded) ---
    z = jnp.dot(xcol_ref[...], wc_ref[...], preferred_element_type=jnp.float32)
    z = jnp.maximum(z + bc_ref[...], 0.0)
    z = z * s1_ref[...] + t1_ref[...]
    # AvgPool1d(64): mean over the (single, last) pooling window per sample.
    x1 = z.reshape(N, P, C1).mean(axis=1)                       # (N, C1)

    # --- LSTM1 input projection hoisted out of the recurrence --------------
    xp1 = jnp.dot(x1, wih1_ref[...],
                  preferred_element_type=jnp.float32) + b1_ref[...]   # (N, 4*H1)

    whh1 = whh1_ref[...]
    wih2 = wih2_ref[...]
    whh2 = whh2_ref[...]
    b2 = b2_ref[...]
    s2 = s2_ref[...]
    t2 = t2_ref[...]

    def cell(gates, c, H):            # PyTorch gate order: i, f, g, o
        i = jax.nn.sigmoid(gates[:, 0 * H:1 * H])
        f = jax.nn.sigmoid(gates[:, 1 * H:2 * H])
        g = jnp.tanh(gates[:, 2 * H:3 * H])
        o = jax.nn.sigmoid(gates[:, 3 * H:4 * H])
        c = f * c + i * g
        return o * jnp.tanh(c), c

    h1 = jnp.zeros((1, H1), jnp.float32)
    c1 = jnp.zeros((1, H1), jnp.float32)
    h2 = jnp.zeros((1, H2), jnp.float32)
    c2 = jnp.zeros((1, H2), jnp.float32)

    # Sequence length == original batch N (small & static) -> fully unrolled
    # so the scheduler can overlap VPU/EUP gate math with the next step's MXU
    # pushes.  (For large N switch to lax.fori_loop(..., unroll=True).)
    h2_rows = []
    for t in range(N):
        # LSTM1 step (batch = 1: only the last pooled column is consumed).
        g1 = xp1[t:t + 1, :] + jnp.dot(h1, whh1,
                                       preferred_element_type=jnp.float32)
        h1, c1 = cell(g1, c1, H1)
        u = jnp.tanh(h1) * s2 + t2                      # tanh -> BN2 (eval)
        # LSTM2 step (its input depends on this step -> cannot hoist).
        g2 = (jnp.dot(u, wih2, preferred_element_type=jnp.float32)
              + jnp.dot(h2, whh2, preferred_element_type=jnp.float32) + b2)
        h2, c2 = cell(g2, c2, H2)
        h2_rows.append(h2)

    # --- Epilogue, vectorised over all steps: tanh -> BN3 -> Dense -> sigmoid
    y2 = jnp.concatenate(h2_rows, axis=0)               # (N, H2)
    v = jnp.tanh(y2) * s3_ref[...] + t3_ref[...]
    logits = jnp.dot(v, wd_ref[...],
                     preferred_element_type=jnp.float32) + bd_ref[...]
    out_ref[...] = jax.nn.sigmoid(logits)


# ---------------------------------------------------------------------------
# Wrappers
# ---------------------------------------------------------------------------
def _run_fused(xcol, q, n):
    vmem = pl.BlockSpec(memory_space=pltpu.MemorySpace.VMEM)
    args = (xcol, q['wc'], q['bc'], q['s1'], q['t1'],
            q['wih1'], q['whh1'], q['b1'], q['s2'], q['t2'],
            q['wih2'], q['whh2'], q['b2'], q['s3'], q['t3'],
            q['wd'], q['bd'])
    return pl.pallas_call(
        cnn_lstm_kernel,
        out_shape=jax.ShapeDtypeStruct((n, 1), jnp.float32),
        in_specs=[vmem] * len(args),
        out_specs=vmem,
    )(*args)


@jax.jit
def cnn_lstm_forward(x_ncl, q):
    """x_ncl: (N, C_in, L) PyTorch NCL layout; q: prepared (fused) params."""
    N, Cin, L = x_ncl.shape
    Lout = L - KCONV + 1
    T = Lout // POOL            # AvgPool1d(64) drops the remainder, like PyTorch
    assert T >= 1, "need L - 2 >= 64"
    start = (T - 1) * POOL
    # Only the last pooled column feeds the consumed LSTM1 batch column, and it
    # only depends on the last POOL + K - 1 input positions -> slice, then
    # im2col the K=3 taps into the contraction dim (Cin -> K*Cin).
    xw = jnp.transpose(x_ncl[:, :, start:start + POOL + KCONV - 1], (0, 2, 1))
    xcol = jnp.concatenate([xw[:, k:k + POOL, :] for k in range(KCONV)], axis=-1)
    xcol = xcol.reshape(N * POOL, KCONV * Cin)
    return _run_fused(xcol, q, N)


def prepare_params(p):
    """One-time (eager) param prep: gate fusion, BN folding, conv reshaping."""
    K, Cin, C1 = p['w_conv'].shape

    def fuse_w(w):   # (4, I, H) -> (I, 4H), gate blocks [i|f|g|o]
        return jnp.transpose(w, (1, 0, 2)).reshape(w.shape[1], 4 * w.shape[2])

    def fuse_b(b):   # (4, 1, H) -> (1, 4H)
        return jnp.transpose(b, (1, 0, 2)).reshape(1, 4 * b.shape[2])

    def fold_bn(g, be, m, v):
        s = g * lax.rsqrt(v + EPS)
        return s, be - m * s

    q = {}
    q['wc'] = p['w_conv'].reshape(K * Cin, C1)     # row index = k*Cin + c
    q['bc'] = p['b_conv']
    q['s1'], q['t1'] = fold_bn(p['g1'], p['be1'], p['m1'], p['v1'])
    q['wih1'], q['whh1'], q['b1'] = fuse_w(p['wih1']), fuse_w(p['whh1']), fuse_b(p['b1'])
    q['s2'], q['t2'] = fold_bn(p['g2'], p['be2'], p['m2'], p['v2'])
    q['wih2'], q['whh2'], q['b2'] = fuse_w(p['wih2']), fuse_w(p['whh2']), fuse_b(p['b2'])
    q['s3'], q['t3'] = fold_bn(p['g3'], p['be3'], p['m3'], p['v3'])
    q['wd'], q['bd'] = p['wd'], p['bd']
    return q


# ---------------------------------------------------------------------------
# Pure-JAX reference (independent, full/unsliced computation) for correctness
# ---------------------------------------------------------------------------
def _lstm_ref(x_sbi, wih, whh, b):
    B = x_sbi.shape[1]
    H = wih.shape[-1]

    def step(carry, xt):
        h, c = carry
        gs = [xt @ wih[g] + h @ whh[g] + b[g] for g in range(4)]
        i = jax.nn.sigmoid(gs[0]); f = jax.nn.sigmoid(gs[1])
        gg = jnp.tanh(gs[2]); o = jax.nn.sigmoid(gs[3])
        c = f * c + i * gg
        h = o * jnp.tanh(c)
        return (h, c), h

    init = (jnp.zeros((B, H), jnp.float32), jnp.zeros((B, H), jnp.float32))
    _, ys = lax.scan(step, init, x_sbi)
    return ys


def reference_forward(x_ncl, p):
    w_oik = jnp.transpose(p['w_conv'], (2, 1, 0))  # (Cout, Cin, K)
    z = lax.conv_general_dilated(x_ncl, w_oik, window_strides=(1,),
                                 padding='VALID',
                                 dimension_numbers=('NCH', 'OIH', 'NCH'))
    z = z + p['b_conv'].reshape(1, -1, 1)
    z = jax.nn.relu(z)
    z = ((z - p['m1'].reshape(1, -1, 1))
         * lax.rsqrt(p['v1'].reshape(1, -1, 1) + EPS)
         * p['g1'].reshape(1, -1, 1) + p['be1'].reshape(1, -1, 1))
    N, C, Lout = z.shape
    T = Lout // POOL
    z = z[:, :, :T * POOL].reshape(N, C, T, POOL).mean(axis=3)   # AvgPool1d(64)
    z = jnp.transpose(z, (0, 2, 1))                              # (N, T, 64)
    y1 = jnp.tanh(_lstm_ref(z, p['wih1'], p['whh1'], p['b1']))[:, -1, :]
    y1 = (y1 - p['m2']) * lax.rsqrt(p['v2'] + EPS) * p['g2'] + p['be2']
    y2 = jnp.tanh(_lstm_ref(y1[:, None, :], p['wih2'], p['whh2'], p['b2']))[:, -1, :]
    y2 = (y2 - p['m3']) * lax.rsqrt(p['v3'] + EPS) * p['g3'] + p['be3']
    return jax.nn.sigmoid(y2 @ p['wd'] + p['bd'])


# ---------------------------------------------------------------------------
# Deterministic parameter construction
# ---------------------------------------------------------------------------
def init_params(key, cin=26, cconv=64, h1=128, h2=80):
    keys = iter(jax.random.split(key, 32))

    def nrm(shape, scale=0.1):
        return scale * jax.random.normal(next(keys), shape, jnp.float32)

    def var(shape):
        return jax.random.uniform(next(keys), shape, jnp.float32, 0.5, 1.5)

    p = {}
    p['w_conv'] = nrm((KCONV, cin, cconv))      # (K, Cin, Cout)
    p['b_conv'] = nrm((1, cconv))
    p['g1'], p['be1'], p['m1'] = 1.0 + nrm((1, cconv)), nrm((1, cconv)), nrm((1, cconv))
    p['v1'] = var((1, cconv))
    p['wih1'], p['whh1'], p['b1'] = nrm((4, cconv, h1)), nrm((4, h1, h1)), nrm((4, 1, h1))
    p['g2'], p['be2'], p['m2'] = 1.0 + nrm((1, h1)), nrm((1, h1)), nrm((1, h1))
    p['v2'] = var((1, h1))
    p['wih2'], p['whh2'], p['b2'] = nrm((4, h1, h2)), nrm((4, h2, h2)), nrm((4, 1, h2))
    p['g3'], p['be3'], p['m3'] = 1.0 + nrm((1, h2)), nrm((1, h2)), nrm((1, h2))
    p['v3'] = var((1, h2))
    p['wd'], p['bd'] = nrm((h2, 1)), nrm((1, 1))
    return p


if __name__ == "__main__":
    # Small shapes: batch=2, in_channels=26 (module default), L=258 so that
    # the conv output length 256 pools (window 64) into T=4 timesteps.
    N, CIN, L = 2, 26, 258
    key = jax.random.PRNGKey(0)
    pkey, xkey = jax.random.split(key)
    params = init_params(pkey, cin=CIN)
    fused_params = prepare_params(params)
    x = jax.random.normal(xkey, (N, CIN, L), jnp.float32)

    out = jax.block_until_ready(cnn_lstm_forward(x, fused_params))
    assert out.shape == (N, 1)

    ref = jax.block_until_ready(reference_forward(x, params))
    np.testing.assert_allclose(np.asarray(out), np.asarray(ref),
                               rtol=1e-4, atol=1e-4)
    print("KERNEL_OK")
</pallas_src>

<mosaic_0001>
module attributes {stable_mosaic.version = 11 : i64} {
  func.func @cnn_lstm_kernel(%arg0: memref<128x78xf32, #tpu.memory_space<vmem>>, %arg1: memref<78x64xf32, #tpu.memory_space<vmem>>, %arg2: memref<1x64xf32, #tpu.memory_space<vmem>>, %arg3: memref<1x64xf32, #tpu.memory_space<vmem>>, %arg4: memref<1x64xf32, #tpu.memory_space<vmem>>, %arg5: memref<64x512xf32, #tpu.memory_space<vmem>>, %arg6: memref<128x512xf32, #tpu.memory_space<vmem>>, %arg7: memref<1x512xf32, #tpu.memory_space<vmem>>, %arg8: memref<1x128xf32, #tpu.memory_space<vmem>>, %arg9: memref<1x128xf32, #tpu.memory_space<vmem>>, %arg10: memref<128x320xf32, #tpu.memory_space<vmem>>, %arg11: memref<80x320xf32, #tpu.memory_space<vmem>>, %arg12: memref<1x320xf32, #tpu.memory_space<vmem>>, %arg13: memref<1x80xf32, #tpu.memory_space<vmem>>, %arg14: memref<1x80xf32, #tpu.memory_space<vmem>>, %arg15: memref<80x1xf32, #tpu.memory_space<vmem>>, %arg16: memref<1x1xf32, #tpu.memory_space<vmem>>, %arg17: memref<2x1xf32, #tpu.memory_space<vmem>>) attributes {dimension_semantics = [], scalar_prefetch = 0 : i64, scratch_operands = 0 : i64, tpu.core_type = #tpu.core_type<tc>} {
    %c0 = arith.constant 0 : index
    %c0_0 = arith.constant 0 : index
    %0 = vector.load %arg0[%c0, %c0_0] : memref<128x78xf32, #tpu.memory_space<vmem>>, vector<128x78xf32>
    %c0_1 = arith.constant 0 : index
    %c0_2 = arith.constant 0 : index
    %1 = vector.load %arg1[%c0_1, %c0_2] : memref<78x64xf32, #tpu.memory_space<vmem>>, vector<78x64xf32>
    %cst = arith.constant dense<0.000000e+00> : vector<128x64xf32>
    %2 = tpu.matmul %0, %1, %cst {dimension_numbers = #tpu.dot_dimension_numbers<[1], [0], [0], [1], [0, 0, 1, 1], [], []>} : vector<128x78xf32>, vector<78x64xf32>, vector<128x64xf32> -> vector<128x64xf32>
    %c0_3 = arith.constant 0 : index
    %c0_4 = arith.constant 0 : index
    %3 = vector.load %arg2[%c0_3, %c0_4] : memref<1x64xf32, #tpu.memory_space<vmem>>, vector<1x64xf32>
    %4 = vector.broadcast %3 : vector<1x64xf32> to vector<128x64xf32>
    %5 = arith.addf %2, %4 : vector<128x64xf32>
    %cst_5 = arith.constant 0.000000e+00 : f32
    %6 = vector.broadcast %cst_5 : f32 to vector<128x64xf32>
    %7 = arith.maximumf %5, %6 : vector<128x64xf32>
    %c0_6 = arith.constant 0 : index
    %c0_7 = arith.constant 0 : index
    %8 = vector.load %arg3[%c0_6, %c0_7] : memref<1x64xf32, #tpu.memory_space<vmem>>, vector<1x64xf32>
    %9 = vector.broadcast %8 : vector<1x64xf32> to vector<128x64xf32>
    %10 = arith.mulf %7, %9 : vector<128x64xf32>
    %c0_8 = arith.constant 0 : index
    %c0_9 = arith.constant 0 : index
    %11 = vector.load %arg4[%c0_8, %c0_9] : memref<1x64xf32, #tpu.memory_space<vmem>>, vector<1x64xf32>
    %12 = vector.broadcast %11 : vector<1x64xf32> to vector<128x64xf32>
    %13 = arith.addf %10, %12 : vector<128x64xf32>
    %14 = vector.shape_cast %13 : vector<128x64xf32> to vector<2x64x64xf32>
    %cst_10 = arith.constant dense<0.000000e+00> : vector<2x64xf32>
    %15 = vector.multi_reduction <add>, %14, %cst_10 [1] : vector<2x64x64xf32> to vector<2x64xf32>
    %cst_11 = arith.constant 6.400000e+01 : f32
    %16 = vector.broadcast %cst_11 : f32 to vector<2x64xf32>
    %17 = arith.divf %15, %16 : vector<2x64xf32>
    %c0_12 = arith.constant 0 : index
    %c0_13 = arith.constant 0 : index
    %18 = vector.load %arg5[%c0_12, %c0_13] : memref<64x512xf32, #tpu.memory_space<vmem>>, vector<64x512xf32>
    %cst_14 = arith.constant dense<0.000000e+00> : vector<2x512xf32>
    %19 = tpu.matmul %17, %18, %cst_14 {dimension_numbers = #tpu.dot_dimension_numbers<[1], [0], [0], [1], [0, 0, 1, 1], [], []>} : vector<2x64xf32>, vector<64x512xf32>, vector<2x512xf32> -> vector<2x512xf32>
    %c0_15 = arith.constant 0 : index
    %c0_16 = arith.constant 0 : index
    %20 = vector.load %arg7[%c0_15, %c0_16] : memref<1x512xf32, #tpu.memory_space<vmem>>, vector<1x512xf32>
    %21 = vector.broadcast %20 : vector<1x512xf32> to vector<2x512xf32>
    %22 = arith.addf %19, %21 : vector<2x512xf32>
    %c0_17 = arith.constant 0 : index
    %c0_18 = arith.constant 0 : index
    %23 = vector.load %arg6[%c0_17, %c0_18] : memref<128x512xf32, #tpu.memory_space<vmem>>, vector<128x512xf32>
    %c0_19 = arith.constant 0 : index
    %c0_20 = arith.constant 0 : index
    %24 = vector.load %arg10[%c0_19, %c0_20] : memref<128x320xf32, #tpu.memory_space<vmem>>, vector<128x320xf32>
    %c0_21 = arith.constant 0 : index
    %c0_22 = arith.constant 0 : index
    %25 = vector.load %arg11[%c0_21, %c0_22] : memref<80x320xf32, #tpu.memory_space<vmem>>, vector<80x320xf32>
    %c0_23 = arith.constant 0 : index
    %c0_24 = arith.constant 0 : index
    %26 = vector.load %arg12[%c0_23, %c0_24] : memref<1x320xf32, #tpu.memory_space<vmem>>, vector<1x320xf32>
    %c0_25 = arith.constant 0 : index
    %c0_26 = arith.constant 0 : index
    %27 = vector.load %arg8[%c0_25, %c0_26] : memref<1x128xf32, #tpu.memory_space<vmem>>, vector<1x128xf32>
    %c0_27 = arith.constant 0 : index
    %c0_28 = arith.constant 0 : index
    %28 = vector.load %arg9[%c0_27, %c0_28] : memref<1x128xf32, #tpu.memory_space<vmem>>, vector<1x128xf32>
    %cst_29 = arith.constant 0.000000e+00 : f32
    %29 = vector.broadcast %cst_29 : f32 to vector<1x128xf32>
    %cst_30 = arith.constant 0.000000e+00 : f32
    %30 = vector.broadcast %cst_30 : f32 to vector<1x128xf32>
    %cst_31 = arith.constant 0.000000e+00 : f32
    %31 = vector.broadcast %cst_31 : f32 to vector<1x80xf32>
    %cst_32 = arith.constant 0.000000e+00 : f32
    %32 = vector.broadcast %cst_32 : f32 to vector<1x80xf32>
    %33 = vector.extract_strided_slice %22 {offsets = [0, 0], sizes = [1, 512], strides = [1, 1]} : vector<2x512xf32> to vector<1x512xf32>
    %cst_33 = arith.constant dense<0.000000e+00> : vector<1x512xf32>
    %34 = tpu.matmul %29, %23, %cst_33 {dimension_numbers = #tpu.dot_dimension_numbers<[1], [0], [0], [1], [0, 0, 1, 1], [], []>} : vector<1x128xf32>, vector<128x512xf32>, vector<1x512xf32> -> vector<1x512xf32>
    %35 = arith.addf %33, %34 : vector<1x512xf32>
    %36 = vector.extract_strided_slice %35 {offsets = [0, 0], sizes = [1, 128], strides = [1, 1]} : vector<1x512xf32> to vector<1x128xf32>
    %37 = arith.negf %36 : vector<1x128xf32>
    %38 = math.exp %37 : vector<1x128xf32>
    %cst_34 = arith.constant 1.000000e+00 : f32
    %39 = vector.broadcast %cst_34 : f32 to vector<1x128xf32>
    %40 = arith.addf %39, %38 : vector<1x128xf32>
    %41 = arith.divf %39, %40 : vector<1x128xf32>
    %42 = vector.extract_strided_slice %35 {offsets = [0, 128], sizes = [1, 128], strides = [1, 1]} : vector<1x512xf32> to vector<1x128xf32>
    %43 = arith.negf %42 : vector<1x128xf32>
    %44 = math.exp %43 : vector<1x128xf32>
    %cst_35 = arith.constant 1.000000e+00 : f32
    %45 = vector.broadcast %cst_35 : f32 to vector<1x128xf32>
    %46 = arith.addf %45, %44 : vector<1x128xf32>
    %47 = arith.divf %45, %46 : vector<1x128xf32>
    %48 = vector.extract_strided_slice %35 {offsets = [0, 256], sizes = [1, 128], strides = [1, 1]} : vector<1x512xf32> to vector<1x128xf32>
    %49 = math.tanh %48 : vector<1x128xf32>
    %50 = vector.extract_strided_slice %35 {offsets = [0, 384], sizes = [1, 128], strides = [1, 1]} : vector<1x512xf32> to vector<1x128xf32>
    %51 = arith.negf %50 : vector<1x128xf32>
    %52 = math.exp %51 : vector<1x128xf32>
    %cst_36 = arith.constant 1.000000e+00 : f32
    %53 = vector.broadcast %cst_36 : f32 to vector<1x128xf32>
    %54 = arith.addf %53, %52 : vector<1x128xf32>
    %55 = arith.divf %53, %54 : vector<1x128xf32>
    %56 = arith.mulf %47, %30 : vector<1x128xf32>
    %57 = arith.mulf %41, %49 : vector<1x128xf32>
    %58 = arith.addf %56, %57 : vector<1x128xf32>
    %59 = math.tanh %58 : vector<1x128xf32>
    %60 = arith.mulf %55, %59 : vector<1x128xf32>
    %61 = math.tanh %60 : vector<1x128xf32>
    %62 = arith.mulf %61, %27 : vector<1x128xf32>
    %63 = arith.addf %62, %28 : vector<1x128xf32>
    %cst_37 = arith.constant dense<0.000000e+00> : vector<1x320xf32>
    %64 = tpu.matmul %63, %24, %cst_37 {dimension_numbers = #tpu.dot_dimension_numbers<[1], [0], [0], [1], [0, 0, 1, 1], [], []>} : vector<1x128xf32>, vector<128x320xf32>, vector<1x320xf32> -> vector<1x320xf32>
    %cst_38 = arith.constant dense<0.000000e+00> : vector<1x320xf32>
    %65 = tpu.matmul %31, %25, %cst_38 {dimension_numbers = #tpu.dot_dimension_numbers<[1], [0], [0], [1], [0, 0, 1, 1], [], []>} : vector<1x80xf32>, vector<80x320xf32>, vector<1x320xf32> -> vector<1x320xf32>
    %66 = arith.addf %64, %65 : vector<1x320xf32>
    %67 = arith.addf %66, %26 : vector<1x320xf32>
    %68 = vector.extract_strided_slice %67 {offsets = [0, 0], sizes = [1, 80], strides = [1, 1]} : vector<1x320xf32> to vector<1x80xf32>
    %69 = arith.negf %68 : vector<1x80xf32>
    %70 = math.exp %69 : vector<1x80xf32>
    %cst_39 = arith.constant 1.000000e+00 : f32
    %71 = vector.broadcast %cst_39 : f32 to vector<1x80xf32>
    %72 = arith.addf %71, %70 : vector<1x80xf32>
    %73 = arith.divf %71, %72 : vector<1x80xf32>
    %74 = vector.extract_strided_slice %67 {offsets = [0, 80], sizes = [1, 80], strides = [1, 1]} : vector<1x320xf32> to vector<1x80xf32>
    %75 = arith.negf %74 : vector<1x80xf32>
    %76 = math.exp %75 : vector<1x80xf32>
    %cst_40 = arith.constant 1.000000e+00 : f32
    %77 = vector.broadcast %cst_40 : f32 to vector<1x80xf32>
    %78 = arith.addf %77, %76 : vector<1x80xf32>
    %79 = arith.divf %77, %78 : vector<1x80xf32>
    %80 = vector.extract_strided_slice %67 {offsets = [0, 160], sizes = [1, 80], strides = [1, 1]} : vector<1x320xf32> to vector<1x80xf32>
    %81 = math.tanh %80 : vector<1x80xf32>
    %82 = vector.extract_strided_slice %67 {offsets = [0, 240], sizes = [1, 80], strides = [1, 1]} : vector<1x320xf32> to vector<1x80xf32>
    %83 = arith.negf %82 : vector<1x80xf32>
    %84 = math.exp %83 : vector<1x80xf32>
    %cst_41 = arith.constant 1.000000e+00 : f32
    %85 = vector.broadcast %cst_41 : f32 to vector<1x80xf32>
    %86 = arith.addf %85, %84 : vector<1x80xf32>
    %87 = arith.divf %85, %86 : vector<1x80xf32>
    %88 = arith.mulf %79, %32 : vector<1x80xf32>
    %89 = arith.mulf %73, %81 : vector<1x80xf32>
    %90 = arith.addf %88, %89 : vector<1x80xf32>
    %91 = math.tanh %90 : vector<1x80xf32>
    %92 = arith.mulf %87, %91 : vector<1x80xf32>
    %93 = vector.extract_strided_slice %22 {offsets = [1, 0], sizes = [1, 512], strides = [1, 1]} : vector<2x512xf32> to vector<1x512xf32>
    %cst_42 = arith.constant dense<0.000000e+00> : vector<1x512xf32>
    %94 = tpu.matmul %60, %23, %cst_42 {dimension_numbers = #tpu.dot_dimension_numbers<[1], [0], [0], [1], [0, 0, 1, 1], [], []>} : vector<1x128xf32>, vector<128x512xf32>, vector<1x512xf32> -> vector<1x512xf32>
    %95 = arith.addf %93, %94 : vector<1x512xf32>
    %96 = vector.extract_strided_slice %95 {offsets = [0, 0], sizes = [1, 128], strides = [1, 1]} : vector<1x512xf32> to vector<1x128xf32>
    %97 = arith.negf %96 : vector<1x128xf32>
    %98 = math.exp %97 : vector<1x128xf32>
    %cst_43 = arith.constant 1.000000e+00 : f32
    %99 = vector.broadcast %cst_43 : f32 to vector<1x128xf32>
    %100 = arith.addf %99, %98 : vector<1x128xf32>
    %101 = arith.divf %99, %100 : vector<1x128xf32>
    %102 = vector.extract_strided_slice %95 {offsets = [0, 128], sizes = [1, 128], strides = [1, 1]} : vector<1x512xf32> to vector<1x128xf32>
    %103 = arith.negf %102 : vector<1x128xf32>
    %104 = math.exp %103 : vector<1x128xf32>
    %cst_44 = arith.constant 1.000000e+00 : f32
    %105 = vector.broadcast %cst_44 : f32 to vector<1x128xf32>
    %106 = arith.addf %105, %104 : vector<1x128xf32>
    %107 = arith.divf %105, %106 : vector<1x128xf32>
    %108 = vector.extract_strided_slice %95 {offsets = [0, 256], sizes = [1, 128], strides = [1, 1]} : vector<1x512xf32> to vector<1x128xf32>
    %109 = math.tanh %108 : vector<1x128xf32>
    %110 = vector.extract_strided_slice %95 {offsets = [0, 384], sizes = [1, 128], strides = [1, 1]} : vector<1x512xf32> to vector<1x128xf32>
    %111 = arith.negf %110 : vector<1x128xf32>
    %112 = math.exp %111 : vector<1x128xf32>
    %cst_45 = arith.constant 1.000000e+00 : f32
    %113 = vector.broadcast %cst_45 : f32 to vector<1x128xf32>
    %114 = arith.addf %113, %112 : vector<1x128xf32>
    %115 = arith.divf %113, %114 : vector<1x128xf32>
    %116 = arith.mulf %107, %58 : vector<1x128xf32>
    %117 = arith.mulf %101, %109 : vector<1x128xf32>
    %118 = arith.addf %116, %117 : vector<1x128xf32>
    %119 = math.tanh %118 : vector<1x128xf32>
    %120 = arith.mulf %115, %119 : vector<1x128xf32>
    %121 = math.tanh %120 : vector<1x128xf32>
    %122 = arith.mulf %121, %27 : vector<1x128xf32>
    %123 = arith.addf %122, %28 : vector<1x128xf32>
    %cst_46 = arith.constant dense<0.000000e+00> : vector<1x320xf32>
    %124 = tpu.matmul %123, %24, %cst_46 {dimension_numbers = #tpu.dot_dimension_numbers<[1], [0], [0], [1], [0, 0, 1, 1], [], []>} : vector<1x128xf32>, vector<128x320xf32>, vector<1x320xf32> -> vector<1x320xf32>
    %cst_47 = arith.constant dense<0.000000e+00> : vector<1x320xf32>
    %125 = tpu.matmul %92, %25, %cst_47 {dimension_numbers = #tpu.dot_dimension_numbers<[1], [0], [0], [1], [0, 0, 1, 1], [], []>} : vector<1x80xf32>, vector<80x320xf32>, vector<1x320xf32> -> vector<1x320xf32>
    %126 = arith.addf %124, %125 : vector<1x320xf32>
    %127 = arith.addf %126, %26 : vector<1x320xf32>
    %128 = vector.extract_strided_slice %127 {offsets = [0, 0], sizes = [1, 80], strides = [1, 1]} : vector<1x320xf32> to vector<1x80xf32>
    %129 = arith.negf %128 : vector<1x80xf32>
    %130 = math.exp %129 : vector<1x80xf32>
    %cst_48 = arith.constant 1.000000e+00 : f32
    %131 = vector.broadcast %cst_48 : f32 to vector<1x80xf32>
    %132 = arith.addf %131, %130 : vector<1x80xf32>
    %133 = arith.divf %131, %132 : vector<1x80xf32>
    %134 = vector.extract_strided_slice %127 {offsets = [0, 80], sizes = [1, 80], strides = [1, 1]} : vector<1x320xf32> to vector<1x80xf32>
    %135 = arith.negf %134 : vector<1x80xf32>
    %136 = math.exp %135 : vector<1x80xf32>
    %cst_49 = arith.constant 1.000000e+00 : f32
    %137 = vector.broadcast %cst_49 : f32 to vector<1x80xf32>
    %138 = arith.addf %137, %136 : vector<1x80xf32>
    %139 = arith.divf %137, %138 : vector<1x80xf32>
    %140 = vector.extract_strided_slice %127 {offsets = [0, 160], sizes = [1, 80], strides = [1, 1]} : vector<1x320xf32> to vector<1x80xf32>
    %141 = math.tanh %140 : vector<1x80xf32>
    %142 = vector.extract_strided_slice %127 {offsets = [0, 240], sizes = [1, 80], strides = [1, 1]} : vector<1x320xf32> to vector<1x80xf32>
    %143 = arith.negf %142 : vector<1x80xf32>
    %144 = math.exp %143 : vector<1x80xf32>
    %cst_50 = arith.constant 1.000000e+00 : f32
    %145 = vector.broadcast %cst_50 : f32 to vector<1x80xf32>
    %146 = arith.addf %145, %144 : vector<1x80xf32>
    %147 = arith.divf %145, %146 : vector<1x80xf32>
    %148 = arith.mulf %139, %90 : vector<1x80xf32>
    %149 = arith.mulf %133, %141 : vector<1x80xf32>
    %150 = arith.addf %148, %149 : vector<1x80xf32>
    %151 = math.tanh %150 : vector<1x80xf32>
    %152 = arith.mulf %147, %151 : vector<1x80xf32>
    %153 = tpu.concatenate %92, %152 in 0 : vector<1x80xf32>, vector<1x80xf32> -> vector<2x80xf32>
    %154 = math.tanh %153 : vector<2x80xf32>
    %c0_51 = arith.constant 0 : index
    %c0_52 = arith.constant 0 : index
    %155 = vector.load %arg13[%c0_51, %c0_52] : memref<1x80xf32, #tpu.memory_space<vmem>>, vector<1x80xf32>
    %156 = vector.broadcast %155 : vector<1x80xf32> to vector<2x80xf32>
    %157 = arith.mulf %154, %156 : vector<2x80xf32>
    %c0_53 = arith.constant 0 : index
    %c0_54 = arith.constant 0 : index
    %158 = vector.load %arg14[%c0_53, %c0_54] : memref<1x80xf32, #tpu.memory_space<vmem>>, vector<1x80xf32>
    %159 = vector.broadcast %158 : vector<1x80xf32> to vector<2x80xf32>
    %160 = arith.addf %157, %159 : vector<2x80xf32>
    %c0_55 = arith.constant 0 : index
    %c0_56 = arith.constant 0 : index
    %161 = vector.load %arg15[%c0_55, %c0_56] : memref<80x1xf32, #tpu.memory_space<vmem>>, vector<80x1xf32>
    %cst_57 = arith.constant dense<0.000000e+00> : vector<2x1xf32>
    %162 = tpu.matmul %160, %161, %cst_57 {dimension_numbers = #tpu.dot_dimension_numbers<[1], [0], [0], [1], [0, 0, 1, 1], [], []>} : vector<2x80xf32>, vector<80x1xf32>, vector<2x1xf32> -> vector<2x1xf32>
    %c0_58 = arith.constant 0 : index
    %c0_59 = arith.constant 0 : index
    %163 = vector.load %arg16[%c0_58, %c0_59] : memref<1x1xf32, #tpu.memory_space<vmem>>, vector<1x1xf32>
    %164 = vector.broadcast %163 : vector<1x1xf32> to vector<2x1xf32>
    %165 = arith.addf %162, %164 : vector<2x1xf32>
    %166 = arith.negf %165 : vector<2x1xf32>
    %167 = math.exp %166 : vector<2x1xf32>
    %cst_60 = arith.constant 1.000000e+00 : f32
    %168 = vector.broadcast %cst_60 : f32 to vector<2x1xf32>
    %169 = arith.addf %168, %167 : vector<2x1xf32>
    %170 = arith.divf %168, %169 : vector<2x1xf32>
    %c0_61 = arith.constant 0 : index
    %c0_62 = arith.constant 0 : index
    %171 = vector.load %arg17[%c0_61, %c0_62] : memref<2x1xf32, #tpu.memory_space<vmem>>, vector<2x1xf32>
    tpu.vector_store %arg17[%c0_61, %c0_62], %170 {strides = array<i32>} : memref<2x1xf32, #tpu.memory_space<vmem>>, vector<2x1xf32>,
    return
  }
}

</mosaic_0001>

<bundles_post_ra>
// kernel: cnn_lstm_forward.1
= control target key start
LH: loop header
LB: loop body
LE: loop exit
PB: predicated region body
PF: predicated region fallthrough
CT: control target
= control target key end

     0   :  { %vm91_vm0 = vcmask 637952   ;;  %vm140_vm1 = vcmask 1045504   ;;  %vm2741_vm2 = vmmov 1   ;;  %vm351_vm4 = vcmask 523264   ;;  %s2745_s30 = smov 96   ;;  %s2747_s18 = smov 32   ;;  %s4045_s1 = inlined_call_operand.vmem [shape: f32[78,64], index: 1, kind: input, shape index: {}]   ;;  %s4046_s0 = inlined_call_operand.vmem [shape: f32[128,78], index: 0, kind: input, shape index: {}]   ;;  %s4047_s6 = inlined_call_operand.vmem [shape: f32[128,512], index: 6, kind: input, shape index: {}]   ;;  %s4048_s5 = inlined_call_operand.vmem [shape: f32[64,512], index: 5, kind: input, shape index: {}]   ;;  %s4049_s2 = inlined_call_operand.vmem [shape: f32[1,64], index: 2, kind: input, shape index: {}]   ;;  %s4050_s3 = inlined_call_operand.vmem [shape: f32[1,64], index: 3, kind: input, shape index: {}]   ;;  %s4051_s4 = inlined_call_operand.vmem [shape: f32[1,64], index: 4, kind: input, shape index: {}]   ;;  %s4052_s11 = inlined_call_operand.vmem [shape: f32[80,320], index: 11, kind: input, shape index: {}]   ;;  %s4053_s10 = inlined_call_operand.vmem [shape: f32[128,320], index: 10, kind: input, shape index: {}]   ;;  %s4054_s7 = inlined_call_operand.vmem [shape: f32[1,512], index: 7, kind: input, shape index: {}]   ;;  %s4055_s8 = inlined_call_operand.vmem [shape: f32[1,128], index: 8, kind: input, shape index: {}]   ;;  %s4056_s9 = inlined_call_operand.vmem [shape: f32[1,128], index: 9, kind: input, shape index: {}]   ;;  %s4057_s12 = inlined_call_operand.vmem [shape: f32[1,320], index: 12, kind: input, shape index: {}]   ;;  %s4058_s13 = inlined_call_operand.vmem [shape: f32[1,80], index: 13, kind: input, shape index: {}]   ;;  %s4059_s14 = inlined_call_operand.vmem [shape: f32[1,80], index: 14, kind: input, shape index: {}]   ;;  %s4060_s15 = inlined_call_operand.vmem [shape: f32[80,1], index: 15, kind: input, shape index: {}]   ;;  %s4061_s16 = inlined_call_operand.<no memory space> [shape: f32[1,1], index: 16, kind: input, shape index: {}]   ;;  %s4062_s17 = inlined_call_operand.vmem [shape: f32[2,1], index: 17, kind: output, shape index: {}]  }
   0x1   :  { %4101 = sst [smem:[#allocation32_spill]] %s4045_s1  ;;  %vm2286_vm3 = vmpackc.low %vm140_vm1, %vm2741_vm2  ;;  %v600_v31 = vld [vmem:[%s4047_s6 + $0x8] sm:$0xff]  ;;  %v599_v34 = vld [vmem:[%s4047_s6] sm:$0xff]  ;;  %vm453_vm5 = vcmask 1041409   ;;  %vm2744_vm6 = vmmov 0   ;;  %vm1262_vm7 = vcmask 261120  }
   0x2   :  { %4102 = sst [smem:[#allocation33_spill]] %s4046_s0  ;;  %s4103_s26 = sld [smem:[#allocation32_spill]]  ;;  %v604_v32 = vld [vmem:[%s4047_s6 + $0x28] sm:$0xff]  ;;  %v603_v35 = vld [vmem:[%s4047_s6 + $0x20] sm:$0xff]  ;;  %vm1474_vm8 = vcmask 130048   ;;  %vm917_vm9 = vcmask 654336  }
   0x3   :  { %s4104_s24 = sld [smem:[#allocation33_spill]]  ;;  %v2940_v33 = vpack.c.bf16 %v604_v32, %v600_v31  ;;  %v2948_v36 = vpack.c.bf16 %v603_v35, %v599_v34  ;;  %v608_v37 = vld [vmem:[%s4047_s6 + $0x48] sm:$0xff]  ;;  %v607_v40 = vld [vmem:[%s4047_s6 + $0x40] sm:$0xff]  ;;  %s2748_s19 = smov 16   ;;  %vm1817_vm10 = vcmask 1040384   ;;  %vm1946_vm11 = vcmask 1024  }
   0x4   :  { %v612_v38 = vld [vmem:[%s4047_s6 + $0x68] sm:$0xff]  ;;  %v611_v41 = vld [vmem:[%s4047_s6 + $0x60] sm:$0xff] }
   0x5   :  { %v2958_v39 = vpack.c.bf16 %v612_v38, %v608_v37  ;;  %v2966_v42 = vpack.c.bf16 %v611_v41, %v607_v40  ;;  %v616_v43 = vld [vmem:[%s4047_s6 + $0x88] sm:$0xff]  ;;  %v615_v46 = vld [vmem:[%s4047_s6 + $0x80] sm:$0xff]  ;;  %v400_v40 = vld [vmem:[%s4048_s5 + $0x18] sm:$0xff] }
   0x6   :  { %v620_v44 = vld [vmem:[%s4047_s6 + $0xa8] sm:$0xff]  ;;  %v619_v47 = vld [vmem:[%s4047_s6 + $0xa0] sm:$0xff]  ;;  %v404_v41 = vld [vmem:[%s4048_s5 + $0x38] sm:$0xff] }
   0x7   :  { %v2976_v45 = vpack.c.bf16 %v620_v44, %v616_v43  ;;  %v2984_v48 = vpack.c.bf16 %v619_v47, %v615_v46  ;;  %v624_v49 = vld [vmem:[%s4047_s6 + $0xc8] sm:$0xff]  ;;  %v623_v54 = vld [vmem:[%s4047_s6 + $0xc0] sm:$0xff]  ;;  %v2307_v44 = vpack.c.bf16 %v404_v41, %v400_v40 }
   0x8   :  { %v74_v0 = vld [vmem:[%s4103_s26] sm:$0xff]  ;;  %v75_v1 = vld [vmem:[%s4103_s26 + $0x8] sm:$0xff]  ;;  %v76_v2 = vld [vmem:[%s4103_s26 + $0x10] sm:$0xff] }
   0x9   :  { %v2269_v3 = vpack.c.bf16 %v75_v1, %v74_v0  ;;  %v77_v4 = vld [vmem:[%s4103_s26 + $0x18] sm:$0xff]  ;;  %v78_v6 = vld [vmem:[%s4103_s26 + $0x20] sm:$0xff]  ;;  %v79_v7 = vld [vmem:[%s4103_s26 + $0x28] sm:$0xff] }
   0xa   :  { %v2273_v5 = vpack.c.bf16 %v77_v4, %v76_v2  ;;  %v58_v8 = vld [vmem:[%s4104_s24] sm:$0xff]  ;;  %v2277_v9 = vpack.c.bf16 %v79_v7, %v78_v6  ;;  %v80_v10 = vld [vmem:[%s4103_s26 + $0x30] sm:$0xff]  ;;  %v81_v11 = vld [vmem:[%s4103_s26 + $0x38] sm:$0xff] }
   0xb   :  { %2270 = vmatprep.subr.bf16.mxu0 %v2269_v3  ;;  %2106 = vmatprep.mubr.msk.f32.mxu0 %vm91_vm0, %v58_v8  ;;  %v2281_v12 = vpack.c.bf16 %v81_v11, %v80_v10  ;;  %v82_v13 = vld [vmem:[%s4103_s26 + $0x40] sm:$0xff]  ;;  %v83_v14 = vld [vmem:[%s4103_s26 + $0x48] sm:$0x3f]  ;;  %v60_v17 = vld [vmem:[%s4104_s24 + $0x10] sm:$0xff] }
   0xc   :  { %2272 = vmatpush3.bf16.msra.mxu0 %v2269_v3  ;;  %v2285_v15 = vpack.c.bf16 %v83_v14, %v82_v13  ;;  %v59_v16 = vld [vmem:[%s4104_s24 + $0x8] sm:$0xff]  ;;  %v61_v18 = vld [vmem:[%s4104_s24 + $0x18] sm:$0xff]  ;;  %v62_v19 = vld [vmem:[%s4104_s24 + $0x20] sm:$0xff] }
   0xd   :  { %2274 = vmatprep.subr.bf16.mxu0 %v2273_v5  ;;  %v63_v20 = vld [vmem:[%s4104_s24 + $0x28] sm:$0xff]  ;;  %v64_v21 = vld [vmem:[%s4104_s24 + $0x30] sm:$0xff]  ;;  %v65_v22 = vld [vmem:[%s4104_s24 + $0x38] sm:$0xff] }
   0xe   :  { %v66_v23 = vld [vmem:[%s4104_s24 + $0x40] sm:$0xff]  ;;  %v67_v24 = vld [vmem:[%s4104_s24 + $0x48] sm:$0xff]  ;;  %v68_v25 = vld [vmem:[%s4104_s24 + $0x50] sm:$0xff] }
   0xf   :  { %v69_v26 = vld [vmem:[%s4104_s24 + $0x58] sm:$0xff]  ;;  %v70_v27 = vld [vmem:[%s4104_s24 + $0x60] sm:$0xff]  ;;  %v71_v28 = vld [vmem:[%s4104_s24 + $0x68] sm:$0xff] }
  0x10   :  { %2276 = vmatpush3.bf16.msra.mxu0 %v2273_v5  ;;  %v72_v29 = vld [vmem:[%s4104_s24 + $0x70] sm:$0xff]  ;;  %v73_v30 = vld [vmem:[%s4104_s24 + $0x78] sm:$0xff]  ;;  %v628_v50 = vld [vmem:[%s4047_s6 + $0xe8] sm:$0xff] }
  0x11   :  { %2278 = vmatprep.subr.bf16.mxu0 %v2277_v9  ;;  %v2994_v51 = vpack.c.bf16 %v628_v50, %v624_v49  ;;  %v398_v52 = vld [vmem:[%s4048_s5 + $0x8] sm:$0xff]  ;;  %v627_v56 = vld [vmem:[%s4047_s6 + $0xe0] sm:$0xff] }
  0x12   :  { %v402_v53 = vld [vmem:[%s4048_s5 + $0x28] sm:$0xff]  ;;  %v397_v57 = vld [vmem:[%s4048_s5] sm:$0xff]  ;;  %v3015_v59 = vpack.c.bf16 %v627_v56, %v623_v54 }
  0x13   :  { %v2291_v55 = vpack.c.bf16 %v402_v53, %v398_v52  ;;  %v401_v58 = vld [vmem:[%s4048_s5 + $0x20] sm:$0xff]  ;;  %v632_v61 = vld [vmem:[%s4047_s6 + $0x108] sm:$0xff] }
  0x14   :  { %2280 = vmatpush3.bf16.msra.mxu0 %v2277_v9  ;;  %v2293_v60 = vpack.c.bf16 %v401_v58, %v397_v57  ;;  %v636_v62 = vld [vmem:[%s4047_s6 + $0x128] sm:$0xff]  ;;  %v631_v2 = vld [vmem:[%s4047_s6 + $0x100] sm:$0xff] }
  0x15   :  { %2282 = vmatprep.subr.bf16.mxu0 %v2281_v12  ;;  %2292 = vmatprep.subr.bf16.mxu1 %v2291_v55  ;;  %v3024_v63 = vpack.c.bf16 %v636_v62, %v632_v61  ;;  %v406_v0 = vld [vmem:[%s4048_s5 + $0x48] sm:$0xff]  ;;  %v635_v4 = vld [vmem:[%s4047_s6 + $0x120] sm:$0xff] }
  0x16   :  { %2294 = vmatpush1.bf16.msra.mxu1 %v2293_v60  ;;  %v410_v1 = vld [vmem:[%s4048_s5 + $0x68] sm:$0xff]  ;;  %v405_v5 = vld [vmem:[%s4048_s5 + $0x40] sm:$0xff]  ;;  %v3045_v7 = vpack.c.bf16 %v635_v4, %v631_v2 }
  0x17   :  { %v2295_v3 = vpack.c.bf16 %v410_v1, %v406_v0  ;;  %v409_v6 = vld [vmem:[%s4048_s5 + $0x60] sm:$0xff]  ;;  %v640_v9 = vld [vmem:[%s4047_s6 + $0x148] sm:$0xff] }
  0x18   :  { %2284 = vmatpush3.bf16.msra.mxu0 %v2281_v12  ;;  %v2297_v8 = vpack.c.bf16 %v409_v6, %v405_v5  ;;  %v644_v10 = vld [vmem:[%s4047_s6 + $0x168] sm:$0xff]  ;;  %v639_v14 = vld [vmem:[%s4047_s6 + $0x140] sm:$0xff] }
  0x19   :  { %2287 = vmatprep.subr.msk.bf16.mxu0 %vm2286_vm3, %v2285_v15  ;;  %2296 = vmatprep.subr.bf16.mxu1 %v2295_v3  ;;  %v414_v11 = vld [vmem:[%s4048_s5 + $0x88] sm:$0xff]  ;;  %v3057_v12 = vpack.c.bf16 %v644_v10, %v640_v9  ;;  %v425_v32 = vld [vmem:[%s4048_s5 + $0xe0] sm:$0xff] }
  0x1a   :  { %2298 = vmatpush1.bf16.msra.mxu1 %v2297_v8  ;;  %v418_v13 = vld [vmem:[%s4048_s5 + $0xa8] sm:$0xff]  ;;  %v655_v43 = vld [vmem:[%s4047_s6 + $0x1c0] sm:$0xff] }
  0x1b   :  { %v656_v34 = vld [vmem:[%s4047_s6 + $0x1c8] sm:$0xff]  ;;  %v659_v46 = vld [vmem:[%s4047_s6 + $0x1e0] sm:$0xff] }
  0x1c   :  { %2290 = vmatpush3.bf16.msk.msra.mxu0 %vm2286_vm3, %v2285_v15  ;;  %v643_v15 = vld [vmem:[%s4047_s6 + $0x160] sm:$0xff]  ;;  %v660_v35 = vld [vmem:[%s4047_s6 + $0x1e8] sm:$0xff]  ;;  %v3130_v47 = vpack.c.bf16 %v659_v46, %v655_v43 }
  0x1d   :  { %2324 = vmatprep.subr.bf16.mxu0 %v2940_v33  ;;  %v3115_v38 = vpack.c.bf16 %v660_v35, %v656_v34  ;;  %v3139_v49 = vld [vmem:[%s4049_s2] ss:$0 sm:$0xff]  ;;  %s2749_s2 = smov 112  }
  0x1e   :  { %v3145_v54 = vld [vmem:[%s4050_s3] ss:$0 sm:$0xff] }
  0x1f   :  { %2107 = vmatmul.mubr.msk.f32.vlgmr.msra.gmra.mrb[0].mxu0 %vm91_vm0, %v59_v16  ;;  %v2299_v16 = vpack.c.bf16 %v418_v13, %v414_v11  ;;  %v3151_v57 = vld [vmem:[%s4051_s4] ss:$0 sm:$0xff] }
  0x20   :  { %2109 = vmatprep.mubr.msk.f32.mxu0 %vm91_vm0, %v60_v17  ;;  %2326 = vmatpush1.bf16.msra.mxu0 %v2948_v36  ;;  %v3068_v17 = vpack.c.bf16 %v643_v15, %v639_v14 }
  0x21   :  { %2328 = vmatprep.subr.bf16.mxu0 %v2958_v39  ;;  %2300 = vmatprep.subr.bf16.mxu1 %v2299_v16 }
  0x23   :  { %2110 = vmatmul.mubr.msk.f32.gmra.mrb[2].mxu0 %vm91_vm0, %v61_v18  ;;  %v413_v18 = vld [vmem:[%s4048_s5 + $0x80] sm:$0xff] }
  0x24   :  { %2112 = vmatprep.mubr.msk.f32.mxu0 %vm91_vm0, %v62_v19  ;;  %2330 = vmatpush1.bf16.msra.mxu0 %v2966_v42  ;;  %v417_v19 = vld [vmem:[%s4048_s5 + $0xa0] sm:$0xff] }
  0x25   :  { %2332 = vmatprep.subr.bf16.mxu0 %v2976_v45 }
  0x27   :  { %2113 = vmatmul.mubr.msk.f32.gmra.mrb[4].mxu0 %vm91_vm0, %v63_v20  ;;  %v648_v20 = vld [vmem:[%s4047_s6 + $0x188] sm:$0xff] }
  0x28   :  { %2115 = vmatprep.mubr.msk.f32.mxu0 %vm91_vm0, %v64_v21  ;;  %2334 = vmatpush1.bf16.msra.mxu0 %v2984_v48  ;;  %v4065_v21 = vmov 0.0  }
  0x29   :  { %2336 = vmatprep.subr.bf16.mxu0 %v2994_v51  ;;  %521 = vmatprep.mubr.f32.mxu1 %v4065_v21 }
  0x2b   :  { %2116 = vmatmul.mubr.msk.f32.gmra.mrb[6].mxu0 %vm91_vm0, %v65_v22  ;;  %v2301_v22 = vpack.c.bf16 %v417_v19, %v413_v18 }
  0x2c   :  { %2118 = vmatprep.mubr.msk.f32.mxu0 %vm91_vm0, %v66_v23  ;;  %2338 = vmatpush1.bf16.msra.mxu0 %v3015_v59  ;;  %v652_v23 = vld [vmem:[%s4047_s6 + $0x1a8] sm:$0xff] }
  0x2d   :  { %2340 = vmatprep.subr.bf16.mxu0 %v3024_v63  ;;  %2302 = vmatpush1.bf16.msra.mxu1 %v2301_v22 }
  0x2f   :  { %2119 = vmatmul.mubr.msk.f32.gmra.mrb[8].mxu0 %vm91_vm0, %v67_v24  ;;  %v422_v24 = vld [vmem:[%s4048_s5 + $0xc8] sm:$0xff] }
  0x30   :  { %2121 = vmatprep.mubr.msk.f32.mxu0 %vm91_vm0, %v68_v25  ;;  %2342 = vmatpush1.bf16.msra.mxu0 %v3045_v7  ;;  %v426_v25 = vld [vmem:[%s4048_s5 + $0xe8] sm:$0xff] }
  0x31   :  { %2344 = vmatprep.subr.bf16.mxu0 %v3057_v12 }
  0x33   :  { %2122 = vmatmul.mubr.msk.f32.gmra.mrb[10].mxu0 %vm91_vm0, %v69_v26  ;;  %v3091_v26 = vpack.c.bf16 %v652_v23, %v648_v20 }
  0x34   :  { %2124 = vmatprep.mubr.msk.f32.mxu0 %vm91_vm0, %v70_v27  ;;  %v2303_v27 = vpack.c.bf16 %v426_v25, %v422_v24  ;;  %2346 = vmatpush1.bf16.msra.mxu0 %v3068_v17 }
  0x35   :  { %2348 = vmatprep.subr.bf16.mxu0 %v3091_v26 }
  0x36   :  { %2304 = vmatprep.subr.bf16.mxu1 %v2303_v27 }
  0x37   :  { %2125 = vmatmul.mubr.msk.f32.gmra.mrb[12].mxu0 %vm91_vm0, %v71_v28  ;;  %v647_v28 = vld [vmem:[%s4047_s6 + $0x180] sm:$0xff] }
  0x38   :  { %2127 = vmatprep.mubr.msk.f32.mxu0 %vm91_vm0, %v72_v29  ;;  %v651_v29 = vld [vmem:[%s4047_s6 + $0x1a0] sm:$0xff] }
  0x39   :  { %v3103_v31 = vpack.c.bf16 %v651_v29, %v647_v28 }
  0x3b   :  { %2128 = vmatmul.mubr.msk.f32.gmra.mrb[14].mxu0 %vm91_vm0, %v73_v30  ;;  %v421_v30 = vld [vmem:[%s4048_s5 + $0xc0] sm:$0xff] }
  0x3c   :  { %808 = vmatprep.mubr.f32.mxu0 %v4065_v21  ;;  %v2305_v37 = vpack.c.bf16 %v425_v32, %v421_v30  ;;  %2350 = vmatpush1.bf16.msra.mxu0 %v3103_v31 }
  0x3d   :  { %2352 = vmatprep.subr.bf16.mxu0 %v3115_v38 }
  0x3e   :  { %2306 = vmatpush1.bf16.msra.mxu1 %v2305_v37 }
  0x3f   :  { %2308 = vmatprep.subr.bf16.mxu1 %v2307_v44 }
  0x40   :  { %2354 = vmatpush1.bf16.msra.mxu0 %v3130_v47 }
  0x43   :  { %809 = vmatmul.mubr.f32.vlgmr.msra.gmra.mrb[16].mxu0 %v4065_v21 }
  0x44   :  { %985 = vmatprep.mubr.f32.mxu0 %v4065_v21 }
  0xf2   :  { %v2108_v50 = vpop.f32.mrb[0].mxu0 }
  0xf3   :  { %v216_v52 = vadd.f32 %v2108_v50, %v3139_v49  ;;  %v210_v53 = vpop.f32.mrb[1].mxu0 }
  0xf4   :  { %v211_v55 = vadd.f32 %v3139_v49, %v210_v53 }
  0xf5   :  { %v290_v56 = vmax.f32 %v216_v52, 0.0 }
  0xf6   :  { %v289_v58 = vmax.f32 %v211_v55, 0.0  ;;  %v2111_v60 = vpop.f32.mrb[2].mxu0 }
  0xf7   :  { %v313_v61 = vmul.f32 %v3145_v54, %v290_v56  ;;  %v226_v62 = vadd.f32 %v2111_v60, %v3139_v49  ;;  %v220_v0 = vpop.f32.mrb[3].mxu0 }
  0xf8   :  { %v312_v1 = vmul.f32 %v3145_v54, %v289_v58  ;;  %v221_v2 = vadd.f32 %v3139_v49, %v220_v0 }
  0xf9   :  { %v336_v3 = vadd.f32 %v3151_v57, %v313_v61  ;;  %v292_v4 = vmax.f32 %v226_v62, 0.0 }
  0xfa   :  { %v335_v5 = vadd.f32 %v3151_v57, %v312_v1  ;;  %v291_v6 = vmax.f32 %v221_v2, 0.0  ;;  %v2114_v8 = vpop.f32.mrb[4].mxu0 }
  0xfb   :  { %v353_v9 = vsel %vm351_vm4, %v336_v3, 0.0  ;;  %v315_v10 = vmul.f32 %v3145_v54, %v292_v4  ;;  %v236_v11 = vadd.f32 %v2114_v8, %v3139_v49  ;;  %v230_v13 = vpop.f32.mrb[5].mxu0 }
  0xfc   :  { %v352_v14 = vsel %vm351_vm4, %v335_v5, 0.0  ;;  %v314_v15 = vmul.f32 %v3145_v54, %v291_v6  ;;  %v231_v16 = vadd.f32 %v3139_v49, %v230_v13 }
  0xfd   :  { %v354_v18 = vadd.f32 %v353_v9, %v352_v14  ;;  %v294_v19 = vmax.f32 %v236_v11, 0.0  ;;  %v338_v20 = vadd.f32 %v3151_v57, %v315_v10 }
  0xfe   :  { %v337_v22 = vadd.f32 %v3151_v57, %v314_v15  ;;  %v293_v23 = vmax.f32 %v231_v16, 0.0  ;;  %v2117_v24 = vpop.f32.mrb[6].mxu0 }
  0xff   :  { %v317_v25 = vmul.f32 %v3145_v54, %v294_v19  ;;  %v246_v27 = vadd.f32 %v2117_v24, %v3139_v49  ;;  %v240_v28 = vpop.f32.mrb[7].mxu0  ;;  %v357_v37 = vsel %vm351_vm4, %v338_v20, 0.0 }
 0x100   :  { %v355_v29 = vsel %vm351_vm4, %v337_v22, 0.0  ;;  %v316_v30 = vmul.f32 %v3145_v54, %v293_v23  ;;  %v241_v32 = vadd.f32 %v3139_v49, %v240_v28 }
 0x101   :  { %v356_v34 = vadd.f32 %v355_v29, %v354_v18  ;;  %v296_v35 = vmax.f32 %v246_v27, 0.0  ;;  %v340_v40 = vadd.f32 %v3151_v57, %v317_v25 }
 0x102   :  { %v339_v41 = vadd.f32 %v3151_v57, %v316_v30  ;;  %v295_v43 = vmax.f32 %v241_v32, 0.0  ;;  %v2120_v44 = vpop.f32.mrb[8].mxu0 }
 0x103   :  { %v358_v46 = vadd.f32 %v357_v37, %v356_v34  ;;  %v319_v50 = vmul.f32 %v3145_v54, %v296_v35  ;;  %v256_v52 = vadd.f32 %v2120_v44, %v3139_v49  ;;  %v250_v53 = vpop.f32.mrb[9].mxu0  ;;  %v361_v62 = vsel %vm351_vm4, %v340_v40, 0.0 }
 0x104   :  { %v359_v55 = vsel %vm351_vm4, %v339_v41, 0.0  ;;  %v318_v56 = vmul.f32 %v3145_v54, %v295_v43  ;;  %v251_v58 = vadd.f32 %v3139_v49, %v250_v53 }
 0x105   :  { %v360_v60 = vadd.f32 %v359_v55, %v358_v46  ;;  %v298_v61 = vmax.f32 %v256_v52, 0.0  ;;  %v342_v0 = vadd.f32 %v3151_v57, %v319_v50 }
 0x106   :  { %v341_v1 = vadd.f32 %v3151_v57, %v318_v56  ;;  %v297_v2 = vmax.f32 %v251_v58, 0.0  ;;  %v2123_v3 = vpop.f32.mrb[10].mxu0 }
 0x107   :  { %v362_v4 = vadd.f32 %v361_v62, %v360_v60  ;;  %v321_v5 = vmul.f32 %v3145_v54, %v298_v61  ;;  %v266_v6 = vadd.f32 %v2123_v3, %v3139_v49  ;;  %v260_v8 = vpop.f32.mrb[11].mxu0  ;;  %v365_v16 = vsel %vm351_vm4, %v342_v0, 0.0 }
 0x108   :  { %v363_v9 = vsel %vm351_vm4, %v341_v1, 0.0  ;;  %v320_v10 = vmul.f32 %v3145_v54, %v297_v2  ;;  %v261_v11 = vadd.f32 %v3139_v49, %v260_v8 }
 0x109   :  { %v364_v13 = vadd.f32 %v363_v9, %v362_v4  ;;  %v344_v14 = vadd.f32 %v3151_v57, %v321_v5  ;;  %v300_v15 = vmax.f32 %v266_v6, 0.0 }
 0x10a   :  { %v343_v18 = vadd.f32 %v3151_v57, %v320_v10  ;;  %v299_v19 = vmax.f32 %v261_v11, 0.0  ;;  %v2126_v20 = vpop.f32.mrb[12].mxu0 }
 0x10b   :  { %v366_v22 = vadd.f32 %v365_v16, %v364_v13  ;;  %v374_v23 = vsel %vm351_vm4, %v344_v14, 0.0  ;;  %v323_v24 = vmul.f32 %v3145_v54, %v300_v15  ;;  %v276_v25 = vadd.f32 %v2126_v20, %v3139_v49  ;;  %v270_v27 = vpop.f32.mrb[13].mxu0 }
 0x10c   :  { %v373_v28 = vsel %vm351_vm4, %v343_v18, 0.0  ;;  %v322_v29 = vmul.f32 %v3145_v54, %v299_v19  ;;  %v271_v30 = vadd.f32 %v3139_v49, %v270_v27  ;;  %v403_v27 = vld [vmem:[%s4048_s5 + $0x30] sm:$0xff] }
 0x10d   :  { %v375_v32 = vadd.f32 %v374_v23, %v373_v28  ;;  %v302_v34 = vmax.f32 %v276_v25, 0.0  ;;  %v346_v35 = vadd.f32 %v3151_v57, %v323_v24  ;;  %v367_v55 = vrot.slane %v366_v22, 4 }
 0x10e   :  { %v345_v37 = vadd.f32 %v3151_v57, %v322_v29  ;;  %v301_v40 = vmax.f32 %v271_v30, 0.0  ;;  %v2129_v41 = vpop.f32.mrb[14].mxu0  ;;  %v408_v29 = vld [vmem:[%s4048_s5 + $0x58] sm:$0xff] }
 0x10f   :  { %v325_v43 = vmul.f32 %v3145_v54, %v302_v34  ;;  %v286_v44 = vadd.f32 %v2129_v41, %v3139_v49  ;;  %v280_v46 = vpop.f32.mrb[15].mxu0  ;;  %v378_v60 = vsel %vm351_vm4, %v346_v35, 0.0  ;;  %v368_v5 = vadd.f32 %v367_v55, %v366_v22  ;;  %v412_v30 = vld [vmem:[%s4048_s5 + $0x78] sm:$0xff]  ;;  %v411_v41 = vld [vmem:[%s4048_s5 + $0x70] sm:$0xff] }
 0x110   :  { %v376_v50 = vsel %vm351_vm4, %v345_v37, 0.0  ;;  %v324_v52 = vmul.f32 %v3145_v54, %v301_v40  ;;  %v281_v53 = vadd.f32 %v3139_v49, %v280_v46  ;;  %v2311_v37 = vpack.c.bf16 %v412_v30, %v408_v29  ;;  %v407_v40 = vld [vmem:[%s4048_s5 + $0x50] sm:$0xff]  ;;  %v420_v46 = vld [vmem:[%s4048_s5 + $0xb8] sm:$0xff] }
 0x111   :  { %v377_v56 = vadd.f32 %v376_v50, %v375_v32  ;;  %v304_v58 = vmax.f32 %v286_v44, 0.0  ;;  %v348_v61 = vadd.f32 %v3151_v57, %v325_v43  ;;  %v369_v14 = vrot.slane %v368_v5, 2  ;;  %v416_v44 = vld [vmem:[%s4048_s5 + $0x98] sm:$0xff]  ;;  %v419_v55 = vld [vmem:[%s4048_s5 + $0xb0] sm:$0xff] }
 0x112   :  { %v347_v62 = vadd.f32 %v3151_v57, %v324_v52  ;;  %v303_v0 = vmax.f32 %v281_v53, 0.0  ;;  %v2313_v50 = vpack.c.bf16 %v411_v41, %v407_v40  ;;  %v2315_v52 = vpack.c.bf16 %v420_v46, %v416_v44  ;;  %v415_v53 = vld [vmem:[%s4048_s5 + $0x90] sm:$0xff]  ;;  %v650_v46 = vld [vmem:[%s4047_s6 + $0x198] sm:$0xff] }
 0x113   :  { %v379_v1 = vadd.f32 %v378_v60, %v377_v56  ;;  %v327_v2 = vmul.f32 %v3145_v54, %v304_v58  ;;  %v382_v49 = vsel %vm351_vm4, %v348_v61, 0.0  ;;  %v370_v19 = vadd.f32 %v369_v14, %v368_v5  ;;  %v424_v56 = vld [vmem:[%s4048_s5 + $0xd8] sm:$0xff]  ;;  %v601_v5 = vld [vmem:[%s4047_s6 + $0x10] sm:$0xff] }
 0x114   :  { %v380_v3 = vsel %vm351_vm4, %v347_v62, 0.0  ;;  %v326_v4 = vmul.f32 %v3145_v54, %v303_v0  ;;  %v428_v58 = vld [vmem:[%s4048_s5 + $0xf8] sm:$0xff]  ;;  %v2317_v60 = vpack.c.bf16 %v419_v55, %v415_v53  ;;  %v423_v62 = vld [vmem:[%s4048_s5 + $0xd0] sm:$0xff] }
 0x115   :  { %v381_v6 = vadd.f32 %v380_v3, %v379_v1  ;;  %v350_v8 = vadd.f32 %v3151_v57, %v327_v2  ;;  %v371_v54 = vrot.slane %v370_v19, 1  ;;  %v2319_v61 = vpack.c.bf16 %v428_v58, %v424_v56  ;;  %v427_v0 = vld [vmem:[%s4048_s5 + $0xf0] sm:$0xff]  ;;  %v602_v1 = vld [vmem:[%s4047_s6 + $0x18] sm:$0xff] }
 0x116   :  { %v349_v9 = vadd.f32 %v3151_v57, %v326_v4  ;;  %v399_v57 = vld [vmem:[%s4048_s5 + $0x10] sm:$0xff]  ;;  %v606_v2 = vld [vmem:[%s4047_s6 + $0x38] sm:$0xff]  ;;  %v2321_v3 = vpack.c.bf16 %v427_v0, %v423_v62 }
 0x117   :  { %v383_v10 = vadd.f32 %v382_v49, %v381_v6  ;;  %v386_v15 = vsel %vm351_vm4, %v350_v8, 0.0  ;;  %v372_v24 = vadd.f32 %v371_v54, %v370_v19  ;;  %v2309_v35 = vpack.c.bf16 %v403_v27, %v399_v57  ;;  %v605_v6 = vld [vmem:[%s4047_s6 + $0x30] sm:$0xff]  ;;  %v610_v49 = vld [vmem:[%s4047_s6 + $0x58] sm:$0xff] }
 0x118   :  { %v384_v11 = vsel %vm351_vm4, %v349_v9, 0.0  ;;  %v3265_v4 = vpack.c.bf16 %v606_v2, %v602_v1  ;;  %v614_v8 = vld [vmem:[%s4047_s6 + $0x78] sm:$0xff]  ;;  %v3279_v9 = vpack.c.bf16 %v605_v6, %v601_v5  ;;  %v617_v19 = vld [vmem:[%s4047_s6 + $0x90] sm:$0xff]  ;;  %v712_v6 = vld [vmem:[%s4052_s11 + $0x8] sm:$0xff] }
 0x119   :  { %v385_v13 = vadd.f32 %v384_v11, %v383_v10  ;;  %v395_v32 = vmul.f32 0.015625, %v372_v24  ;;  %v3282_v10 = vpack.c.bf16 %v614_v8, %v610_v49  ;;  %v609_v11 = vld [vmem:[%s4047_s6 + $0x50] sm:$0xff]  ;;  %v618_v14 = vld [vmem:[%s4047_s6 + $0x98] sm:$0xff]  ;;  %v715_v49 = vld [vmem:[%s4052_s11 + $0x20] sm:$0xff]  ;;  %v4078_v8 = vmov 0.0|0.0  }
 0x11a   :  { %v626_v54 = vld [vmem:[%s4047_s6 + $0xd8] sm:$0xff]  ;;  %v629_v57 = vld [vmem:[%s4047_s6 + $0xf0] sm:$0xff] }
 0x11b   :  { %v387_v16 = vadd.f32 %v386_v15, %v385_v13  ;;  %v613_v13 = vld [vmem:[%s4047_s6 + $0x70] sm:$0xff]  ;;  %v622_v15 = vld [vmem:[%s4047_s6 + $0xb8] sm:$0xff] }
 0x11c   :  { %v634_v27 = vld [vmem:[%s4047_s6 + $0x118] sm:$0xff]  ;;  %v645_v44 = vld [vmem:[%s4047_s6 + $0x170] sm:$0xff] }
 0x11d   :  { %v388_v18 = vrot.slane %v387_v16, 4  ;;  %v649_v55 = vld [vmem:[%s4047_s6 + $0x190] sm:$0xff]  ;;  %v658_v58 = vld [vmem:[%s4047_s6 + $0x1d8] sm:$0xff] }
 0x11e   :  { %v653_v56 = vld [vmem:[%s4047_s6 + $0x1b0] sm:$0xff] }
 0x11f   :  { %v389_v20 = vadd.f32 %v388_v18, %v387_v16  ;;  %v3298_v16 = vpack.c.bf16 %v613_v13, %v609_v11  ;;  %v3302_v18 = vpack.c.bf16 %v622_v15, %v618_v14  ;;  %v657_v0 = vld [vmem:[%s4047_s6 + $0x1d0] sm:$0xff]  ;;  %v711_v11 = vld [vmem:[%s4052_s11] sm:$0xff]  ;;  %v3420_v13 = vpack.c.bf16 %v715_v49, %v712_v6  ;;  %v714_v14 = vld [vmem:[%s4052_s11 + $0x18] sm:$0xff] }
 0x120   :  { %v661_v1 = vld [vmem:[%s4047_s6 + $0x1f0] sm:$0xff] }
 0x121   :  { %v390_v22 = vrot.slane %v389_v20, 2  ;;  %v3401_v2 = vpack.c.bf16 %v661_v1, %v657_v0  ;;  %v713_v15 = vld [vmem:[%s4052_s11 + $0x10] sm:$0xff]  ;;  %2388 = vmatprep.subr.bf16.mxu0 %v3420_v13  ;;  %v730_v1 = vld [vmem:[%s4052_s11 + $0x98] sm:$0xff] }
 0x122   :  { %v733_v6 = vld [vmem:[%s4052_s11 + $0xb0] sm:$0xff] }
 0x123   :  { %v391_v23 = vadd.f32 %v390_v22, %v389_v20  ;;  %v621_v20 = vld [vmem:[%s4047_s6 + $0xb0] sm:$0xff]  ;;  %v630_v22 = vld [vmem:[%s4047_s6 + $0xf8] sm:$0xff]  ;;  %v3500_v49 = vpack.c.bf16 %v733_v6, %v730_v1  ;;  %v667_v1 = vld [vmem:[%s4053_s10 + $0x20] sm:$0xff] }
 0x124   :  { %v3320_v24 = vpack.c.bf16 %v630_v22, %v626_v54  ;;  %v718_v22 = vld [vmem:[%s4052_s11 + $0x38] sm:$0xff] }
 0x125   :  { %v392_v25 = vrot.slane %v391_v23, 1 }
 0x127   :  { %v393_v28 = vadd.f32 %v392_v25, %v391_v23  ;;  %v3317_v23 = vpack.c.bf16 %v621_v20, %v617_v19  ;;  %v625_v25 = vld [vmem:[%s4047_s6 + $0xd0] sm:$0xff]  ;;  %v716_v19 = vld [vmem:[%s4052_s11 + $0x28] sm:$0xff]  ;;  %v3431_v20 = vpack.c.bf16 %v714_v14, %v711_v11 }
 0x128   :  { %v3335_v29 = vpack.c.bf16 %v629_v57, %v625_v25  ;;  %v3433_v54 = vpack.c.bf16 %v716_v19, %v713_v15  ;;  %v721_v25 = vld [vmem:[%s4052_s11 + $0x50] sm:$0xff]  ;;  %v732_v14 = vld [vmem:[%s4052_s11 + $0xa8] sm:$0xff]  ;;  %v731_v15 = vld [vmem:[%s4052_s11 + $0xa0] sm:$0xff] }
 0x129   :  { %v396_v34 = vmul.f32 0.015625, %v393_v28  ;;  %v638_v28 = vld [vmem:[%s4047_s6 + $0x138] sm:$0xff]  ;;  %v717_v57 = vld [vmem:[%s4052_s11 + $0x30] sm:$0xff]  ;;  %2390 = vmatpush1.bf16.msra.mxu0 %v3431_v20 }
 0x12a   :  { %v3338_v30 = vpack.c.bf16 %v638_v28, %v634_v27  ;;  %v3445_v27 = vpack.c.bf16 %v721_v25, %v718_v22  ;;  %v720_v28 = vld [vmem:[%s4052_s11 + $0x48] sm:$0xff]  ;;  %v729_v11 = vld [vmem:[%s4052_s11 + $0x90] sm:$0xff]  ;;  %v734_v22 = vld [vmem:[%s4052_s11 + $0xb8] sm:$0xff] }
 0x12b   :  { %v454_v43 = vsel %vm453_vm5, %v396_v34, %v395_v32  ;;  %v633_v32 = vld [vmem:[%s4047_s6 + $0x110] sm:$0xff]  ;;  %v3512_v19 = vpack.c.bf16 %v732_v14, %v729_v11  ;;  %v3518_v25 = vpack.c.bf16 %v734_v22, %v731_v15  ;;  %v663_v11 = vld [vmem:[%s4053_s10] sm:$0xff]  ;;  %v666_v14 = vld [vmem:[%s4053_s10 + $0x18] sm:$0xff] }
 0x12c   :  { %1972 = vmatmul.mubr.msk.f32.vlgmr.msra.gmra.mrb[0].mxu1 %vm351_vm4, %v454_v43  ;;  %v637_v34 = vld [vmem:[%s4047_s6 + $0x130] sm:$0xff]  ;;  %2392 = vmatprep.subr.bf16.mxu0 %v3445_v27  ;;  %v3568_v22 = vpack.c.bf16 %v666_v14, %v663_v11  ;;  %v674_v14 = vld [vmem:[%s4053_s10 + $0x58] sm:$0xff] }
 0x12d   :  { %2310 = vmatpush1.bf16.msra.mxu1 %v2309_v35  ;;  %592 = vmatprep.mubr.f32.mxu1 %v4065_v21  ;;  %v642_v35 = vld [vmem:[%s4047_s6 + $0x158] sm:$0xff]  ;;  %v3353_v40 = vpack.c.bf16 %v637_v34, %v633_v32  ;;  %v719_v32 = vld [vmem:[%s4052_s11 + $0x40] sm:$0xff]  ;;  %v665_v15 = vld [vmem:[%s4053_s10 + $0x10] sm:$0xff] }
 0x12e   :  { %2312 = vmatprep.subr.bf16.mxu1 %v2311_v37  ;;  %v646_v37 = vld [vmem:[%s4047_s6 + $0x178] sm:$0xff]  ;;  %4108 = vst [vmem:[#allocation6_spill] sm:$0xff] %v3568_v22 }
 0x12f   :  { %v3356_v41 = vpack.c.bf16 %v646_v37, %v642_v35  ;;  %v722_v34 = vld [vmem:[%s4052_s11 + $0x58] sm:$0xff]  ;;  %v3458_v35 = vpack.c.bf16 %v720_v28, %v717_v57  ;;  %v736_v57 = vld [vmem:[%s4052_s11 + $0xc8] sm:$0xff]  ;;  %v739_v28 = vld [vmem:[%s4052_s11 + $0xe0] sm:$0xff] }
 0x130   :  { %v3460_v37 = vpack.c.bf16 %v722_v34, %v719_v32  ;;  %v3528_v32 = vpack.c.bf16 %v739_v28, %v736_v57  ;;  %v735_v34 = vld [vmem:[%s4052_s11 + $0xc0] sm:$0xff]  ;;  %v668_v57 = vld [vmem:[%s4053_s10 + $0x28] sm:$0xff] }
 0x131   :  { %2314 = vmatpush1.bf16.msra.mxu1 %v2313_v50  ;;  %v654_v50 = vld [vmem:[%s4047_s6 + $0x1b8] sm:$0xff]  ;;  %2394 = vmatpush1.bf16.msra.mxu0 %v3458_v35  ;;  %v3576_v28 = vpack.c.bf16 %v668_v57, %v665_v15  ;;  %v676_v57 = vld [vmem:[%s4053_s10 + $0x68] sm:$0xff] }
 0x132   :  { %2316 = vmatprep.subr.bf16.mxu1 %v2315_v52  ;;  %v3374_v53 = vpack.c.bf16 %v654_v50, %v650_v46  ;;  %v723_v50 = vld [vmem:[%s4052_s11 + $0x60] sm:$0xff] }
 0x133   :  { %4109 = vst [vmem:[#allocation7_spill] sm:$0xff] %v3576_v28 }
 0x135   :  { %2318 = vmatpush1.bf16.msra.mxu1 %v2317_v60  ;;  %v662_v60 = vld [vmem:[%s4047_s6 + $0x1f8] sm:$0xff] }
 0x136   :  { %2320 = vmatprep.subr.bf16.mxu1 %v2319_v61  ;;  %v3389_v61 = vpack.c.bf16 %v653_v56, %v649_v55  ;;  %v3392_v62 = vpack.c.bf16 %v662_v60, %v658_v58  ;;  %v726_v55 = vld [vmem:[%s4052_s11 + $0x78] sm:$0xff]  ;;  %v725_v56 = vld [vmem:[%s4052_s11 + $0x70] sm:$0xff]  ;;  %v728_v60 = vld [vmem:[%s4052_s11 + $0x88] sm:$0xff] }
 0x137   :  { %v3484_v58 = vpack.c.bf16 %v726_v55, %v723_v50  ;;  %v3490_v0 = vpack.c.bf16 %v728_v60, %v725_v56  ;;  %v740_v55 = vld [vmem:[%s4052_s11 + $0xe8] sm:$0xff] }
 0x138   :  { %v664_v60 = vld [vmem:[%s4053_s10 + $0x8] sm:$0xff] }
 0x139   :  { %2322 = vmatpush1.bf16.msra.mxu1 %v2321_v3  ;;  %v3406_v3 = vpop.f32.mrb[16].mxu0  ;;  %v3556_v6 = vpack.c.bf16 %v667_v1, %v664_v60  ;;  %v672_v60 = vld [vmem:[%s4053_s10 + $0x48] sm:$0xff]  ;;  %v671_v1 = vld [vmem:[%s4053_s10 + $0x40] sm:$0xff] }
 0x13a   :  { %2356 = vmatprep.subr.bf16.mxu1 %v3265_v4  ;;  %v3408_v5 = vpop.f32.mrb[17].mxu0  ;;  %v3607_v15 = vpack.c.bf16 %v674_v14, %v671_v1  ;;  %v677_v1 = vld [vmem:[%s4053_s10 + $0x70] sm:$0xff] }
 0x13b   :  { %4107 = vst [vmem:[#allocation5_spill] sm:$0xff] %v3556_v6 }
 0x13c   :  { %1973 = vmatmul.mubr.msk.f32.vlgmr.msra.gmra.mrb[2].mxu1 %vm351_vm4, %v454_v43  ;;  %v641_v43 = vld [vmem:[%s4047_s6 + $0x150] sm:$0xff]  ;;  %4112 = vst [vmem:[#allocation10_spill] sm:$0xff] %v3607_v15 }
 0x13d   :  { %2358 = vmatpush1.bf16.msra.mxu1 %v3279_v9  ;;  %879 = vmatprep.mubr.f32.mxu1 %v4065_v21  ;;  %v3371_v52 = vpack.c.bf16 %v645_v44, %v641_v43  ;;  %v724_v43 = vld [vmem:[%s4052_s11 + $0x68] sm:$0xff]  ;;  %v727_v44 = vld [vmem:[%s4052_s11 + $0x80] sm:$0xff] }
 0x13e   :  { %2360 = vmatprep.subr.bf16.mxu1 %v3282_v10  ;;  %v3473_v46 = vpack.c.bf16 %v727_v44, %v724_v43  ;;  %v738_v43 = vld [vmem:[%s4052_s11 + $0xd8] sm:$0xff]  ;;  %v737_v44 = vld [vmem:[%s4052_s11 + $0xd0] sm:$0xff] }
 0x13f   :  { %v3540_v50 = vpack.c.bf16 %v738_v43, %v735_v34  ;;  %v3546_v56 = vpack.c.bf16 %v740_v55, %v737_v44  ;;  %v670_v34 = vld [vmem:[%s4053_s10 + $0x38] sm:$0xff]  ;;  %v673_v43 = vld [vmem:[%s4053_s10 + $0x50] sm:$0xff] }
 0x140   :  { %2396 = vmatprep.subr.bf16.mxu0 %v3473_v46  ;;  %v3588_v44 = vpack.c.bf16 %v673_v43, %v670_v34  ;;  %v669_v55 = vld [vmem:[%s4053_s10 + $0x30] sm:$0xff]  ;;  %v679_v34 = vld [vmem:[%s4053_s10 + $0x80] sm:$0xff] }
 0x141   :  { %2362 = vmatpush1.bf16.msra.mxu1 %v3298_v16  ;;  %2398 = vmatpush1.bf16.msra.mxu0 %v3484_v58  ;;  %4105 = vst [vmem:[#allocation3_spill] sm:$0xff] %v3540_v50  ;;  %4106 = vst [vmem:[#allocation4_spill] sm:$0xff] %v3546_v56  ;;  %v3600_v11 = vpack.c.bf16 %v672_v60, %v669_v55  ;;  %v3619_v43 = vpack.c.bf16 %v679_v34, %v676_v57  ;;  %v675_v55 = vld [vmem:[%s4053_s10 + $0x60] sm:$0xff]  ;;  %v678_v60 = vld [vmem:[%s4053_s10 + $0x78] sm:$0xff] }
 0x142   :  { %2364 = vmatprep.subr.bf16.mxu1 %v3302_v18  ;;  %2400 = vmatprep.subr.bf16.mxu0 %v3500_v49  ;;  %4110 = vst [vmem:[#allocation8_spill] sm:$0xff] %v3588_v44  ;;  %v3631_v14 = vpack.c.bf16 %v678_v60, %v675_v55  ;;  %v680_v57 = vld [vmem:[%s4053_s10 + $0x88] sm:$0xff]  ;;  %v681_v60 = vld [vmem:[%s4053_s10 + $0x90] sm:$0xff] }
 0x143   :  { %4111 = vst [vmem:[#allocation9_spill] sm:$0xff] %v3600_v11  ;;  %4113 = vst [vmem:[#allocation11_spill] sm:$0xff] %v3619_v43  ;;  %v3637_v34 = vpack.c.bf16 %v680_v57, %v677_v1  ;;  %v684_v1 = vld [vmem:[%s4053_s10 + $0xa8] sm:$0xff]  ;;  %v683_v57 = vld [vmem:[%s4053_s10 + $0xa0] sm:$0xff] }
 0x144   :  { %4114 = vst [vmem:[#allocation12_spill] sm:$0xff] %v3631_v14 }
 0x145   :  { %2366 = vmatpush1.bf16.msra.mxu1 %v3317_v23  ;;  %2402 = vmatpush1.bf16.msra.mxu0 %v3512_v19  ;;  %4115 = vst [vmem:[#allocation13_spill] sm:$0xff] %v3637_v34 }
 0x146   :  { %2368 = vmatprep.subr.bf16.mxu1 %v3320_v24  ;;  %2404 = vmatprep.subr.bf16.mxu0 %v3528_v32 }
 0x149   :  { %2370 = vmatpush1.bf16.msra.mxu1 %v3335_v29  ;;  %2406 = vmatpush1.bf16.msra.mxu0 %v3540_v50 }
 0x14a   :  { %2372 = vmatprep.subr.bf16.mxu1 %v3338_v30  ;;  %2423 = vmatprep.subr.bf16.mxu0 %v3556_v6 }
 0x14c   :  { %986 = vmatmul.mubr.f32.vlgmr.msra.gmra.mrb[18].mxu0 %v4065_v21 }
 0x14d   :  { %2374 = vmatpush1.bf16.msra.mxu1 %v3353_v40  ;;  %2425 = vmatpush1.bf16.msra.mxu0 %v3568_v22 }
 0x14e   :  { %2376 = vmatprep.subr.bf16.mxu1 %v3356_v41  ;;  %1126 = vmatprep.mubr.f32.mxu0 %v4065_v21 }
 0x14f   :  { %2427 = vmatprep.subr.bf16.mxu0 %v3588_v44  ;;  %v705_v44 = vld [vmem:[%s4053_s10 + $0x150] sm:$0xff] }
 0x151   :  { %2378 = vmatpush1.bf16.msra.mxu1 %v3371_v52  ;;  %2429 = vmatpush1.bf16.msra.mxu0 %v3600_v11 }
 0x152   :  { %2380 = vmatprep.subr.bf16.mxu1 %v3374_v53  ;;  %2431 = vmatprep.subr.bf16.mxu0 %v3619_v43  ;;  %v3659_v43 = vpack.c.bf16 %v684_v1, %v681_v60  ;;  %v687_v1 = vld [vmem:[%s4053_s10 + $0xc0] sm:$0xff] }
 0x154   :  { %4117 = vst [vmem:[#allocation15_spill] sm:$0xff] %v3659_v43 }
 0x155   :  { %2382 = vmatpush1.bf16.msra.mxu1 %v3389_v61  ;;  %2433 = vmatpush1.bf16.msra.mxu0 %v3631_v14  ;;  %v691_v14 = vld [vmem:[%s4053_s10 + $0xe0] sm:$0xff] }
 0x156   :  { %2384 = vmatprep.subr.bf16.mxu1 %v3392_v62 }
 0x159   :  { %2386 = vmatpush1.bf16.msra.mxu1 %v3401_v2 }
 0x15a   :  { %2407 = vmatprep.subr.bf16.mxu1 %v4078_v8 }
 0x15c   :  { %880 = vmatmul.mubr.f32.vlgmr.msra.gmra.mrb[4].mxu1 %v4065_v21 }
 0x15d   :  { %2409 = vmatpush3.bf16.msra.mxu1 %v3433_v54  ;;  %2150 = vmatprep.mubr.msk.f32.mxu1 %vm2744_vm6, %v4065_v21 }
 0x15e   :  { %2410 = vmatprep.subr.bf16.mxu1 %v4078_v8 }
 0x161   :  { %2412 = vmatpush3.bf16.msra.mxu1 %v3460_v37 }
 0x162   :  { %2413 = vmatprep.subr.bf16.mxu1 %v4078_v8 }
 0x165   :  { %2415 = vmatpush3.bf16.msra.mxu1 %v3490_v0 }
 0x166   :  { %2416 = vmatprep.subr.bf16.mxu1 %v4078_v8 }
 0x169   :  { %2418 = vmatpush3.bf16.msra.mxu1 %v3518_v25 }
 0x16a   :  { %2419 = vmatprep.subr.bf16.mxu1 %v4078_v8 }
 0x16d   :  { %2421 = vmatpush3.bf16.msra.mxu1 %v3546_v56 }
 0x16e   :  { %2454 = vmatprep.subr.bf16.mxu1 %v4078_v8 }
 0x170   :  { %2151 = vmatmul.mubr.f32.vlgmr.msra.gmra.mrb[6].mxu1 %v4065_v21 }
 0x171   :  { %2456 = vmatpush3.bf16.msra.mxu1 %v3576_v28  ;;  %2185 = vmatprep.mubr.msk.f32.mxu1 %vm2744_vm6, %v4065_v21  ;;  %v682_v21 = vld [vmem:[%s4053_s10 + $0x98] sm:$0xff]  ;;  %v4128_v28 = vmov 0.0|0.0  }
 0x172   :  { %2457 = vmatprep.subr.bf16.mxu1 %v4078_v8 }
 0x175   :  { %2459 = vmatpush3.bf16.msra.mxu1 %v3607_v15  ;;  %v685_v15 = vld [vmem:[%s4053_s10 + $0xb0] sm:$0xff] }
 0x176   :  { %2460 = vmatprep.subr.bf16.mxu1 %v4078_v8  ;;  %v3647_v55 = vpack.c.bf16 %v685_v15, %v682_v21  ;;  %v686_v21 = vld [vmem:[%s4053_s10 + $0xb8] sm:$0xff] }
 0x177   :  { %v3665_v15 = vpack.c.bf16 %v686_v21, %v683_v57  ;;  %v690_v57 = vld [vmem:[%s4053_s10 + $0xd8] sm:$0xff]  ;;  %v689_v21 = vld [vmem:[%s4053_s10 + $0xd0] sm:$0xff] }
 0x178   :  { %4116 = vst [vmem:[#allocation14_spill] sm:$0xff] %v3647_v55  ;;  %2435 = vmatprep.subr.bf16.mxu0 %v3647_v55  ;;  %v3687_v55 = vpack.c.bf16 %v690_v57, %v687_v1  ;;  %v693_v57 = vld [vmem:[%s4053_s10 + $0xf0] sm:$0xff] }
 0x179   :  { %2462 = vmatpush3.bf16.msra.mxu1 %v3637_v34  ;;  %4118 = vst [vmem:[#allocation16_spill] sm:$0xff] %v3665_v15  ;;  %v688_v34 = vld [vmem:[%s4053_s10 + $0xc8] sm:$0xff]  ;;  %2437 = vmatpush1.bf16.msra.mxu0 %v3659_v43  ;;  %v697_v43 = vld [vmem:[%s4053_s10 + $0x110] sm:$0xff] }
 0x17a   :  { %2463 = vmatprep.subr.bf16.mxu1 %v4078_v8  ;;  %v3675_v60 = vpack.c.bf16 %v691_v14, %v688_v34  ;;  %4120 = vst [vmem:[#allocation18_spill] sm:$0xff] %v3687_v55  ;;  %v692_v14 = vld [vmem:[%s4053_s10 + $0xe8] sm:$0xff] }
 0x17b   :  { %v3693_v34 = vpack.c.bf16 %v692_v14, %v689_v21  ;;  %v696_v21 = vld [vmem:[%s4053_s10 + $0x108] sm:$0xff]  ;;  %v695_v14 = vld [vmem:[%s4053_s10 + $0x100] sm:$0xff] }
 0x17c   :  { %4119 = vst [vmem:[#allocation17_spill] sm:$0xff] %v3675_v60  ;;  %2439 = vmatprep.subr.bf16.mxu0 %v3675_v60  ;;  %v3715_v60 = vpack.c.bf16 %v696_v21, %v693_v57  ;;  %v699_v57 = vld [vmem:[%s4053_s10 + $0x120] sm:$0xff]  ;;  %v702_v21 = vld [vmem:[%s4053_s10 + $0x138] sm:$0xff] }
 0x17d   :  { %2465 = vmatpush3.bf16.msra.mxu1 %v3665_v15  ;;  %4121 = vst [vmem:[#allocation19_spill] sm:$0xff] %v3693_v34  ;;  %v694_v15 = vld [vmem:[%s4053_s10 + $0xf8] sm:$0xff]  ;;  %2441 = vmatpush1.bf16.msra.mxu0 %v3687_v55 }
 0x17e   :  { %2466 = vmatprep.subr.bf16.mxu1 %v4078_v8  ;;  %v3703_v1 = vpack.c.bf16 %v697_v43, %v694_v15  ;;  %4123 = vst [vmem:[#allocation21_spill] sm:$0xff] %v3715_v60  ;;  %v698_v43 = vld [vmem:[%s4053_s10 + $0x118] sm:$0xff]  ;;  %v700_v15 = vld [vmem:[%s4053_s10 + $0x128] sm:$0xff] }
 0x17f   :  { %v3727_v55 = vpack.c.bf16 %v698_v43, %v695_v14  ;;  %v709_v14 = vld [vmem:[%s4053_s10 + $0x170] sm:$0xff]  ;;  %v3751_v43 = vpack.c.bf16 %v702_v21, %v699_v57  ;;  %v707_v57 = vld [vmem:[%s4053_s10 + $0x160] sm:$0xff] }
 0x180   :  { %4122 = vst [vmem:[#allocation20_spill] sm:$0xff] %v3703_v1  ;;  %2443 = vmatprep.subr.bf16.mxu0 %v3703_v1  ;;  %v704_v1 = vld [vmem:[%s4053_s10 + $0x148] sm:$0xff] }
 0x181   :  { %2468 = vmatpush3.bf16.msra.mxu1 %v3693_v34  ;;  %v703_v34 = vld [vmem:[%s4053_s10 + $0x140] sm:$0xff]  ;;  %4124 = vst [vmem:[#allocation22_spill] sm:$0xff] %v3727_v55  ;;  %2445 = vmatpush1.bf16.msra.mxu0 %v3715_v60  ;;  %4126 = vst [vmem:[#allocation24_spill] sm:$0xff] %v3751_v43  ;;  %v708_v60 = vld [vmem:[%s4053_s10 + $0x168] sm:$0xff] }
 0x182   :  { %2469 = vmatprep.subr.bf16.mxu1 %v4078_v8  ;;  %v3729_v11 = vpack.c.bf16 %v703_v34, %v700_v15  ;;  %v701_v8 = vld [vmem:[%s4053_s10 + $0x130] sm:$0xff]  ;;  %v706_v34 = vld [vmem:[%s4053_s10 + $0x158] sm:$0xff] }
 0x183   :  { %v3753_v15 = vpack.c.bf16 %v704_v1, %v701_v8  ;;  %v3760_v22 = vpack.c.bf16 %v709_v14, %v706_v34  ;;  %v710_v8 = vld [vmem:[%s4053_s10 + $0x178] sm:$0xff]  ;;  %v3773_v1 = vpack.c.bf16 %v708_v60, %v705_v44  ;;  %v429_v60 = vld [vmem:[%s4054_s7] sm:$0xf] }
 0x184   :  { %4125 = vst [vmem:[#allocation23_spill] sm:$0xff] %v3729_v11  ;;  %2447 = vmatprep.subr.bf16.mxu0 %v3729_v11  ;;  %v3775_v21 = vpack.c.bf16 %v710_v8, %v707_v57 }
 0x185   :  { %2471 = vmatpush3.bf16.msra.mxu1 %v3727_v55  ;;  %4127 = vst [vmem:[#allocation25_spill] sm:$0xff] %v3753_v15  ;;  %4129 = vst [vmem:[#allocation26_spill] sm:$0xff] %v3760_v22  ;;  %2449 = vmatpush1.bf16.msra.mxu0 %v3751_v43  ;;  %v431_v43 = vlaneseq }
 0x186   :  { %2472 = vmatprep.subr.bf16.mxu1 %v4128_v28  ;;  %4130 = vst [vmem:[#allocation27_spill] sm:$0xff] %v3773_v1  ;;  %4131 = vst [vmem:[#allocation28_spill] sm:$0xff] %v3775_v21  ;;  %2451 = vmatprep.subr.bf16.mxu0 %v3760_v22 }
 0x189   :  { %2474 = vmatpush3.bf16.msra.mxu1 %v3753_v15  ;;  %2453 = vmatpush1.bf16.msra.mxu0 %v3773_v1  ;;  %v3783_v15 = vshrl.u32 %v431_v43, 7 }
 0x18a   :  { %2475 = vmatprep.subr.bf16.mxu1 %v4128_v28  ;;  %2479 = vmatprep.subr.bf16.mxu0 %v2940_v33 }
 0x18b   :  { %v4093_v44 = vsub.s32 1, %v3783_v15  ;;  %v3790_v57 = vsub.s32 0, %v3783_v15  ;;  %v445_v56 = vsub.s32 3, %v3783_v15 }
 0x18d   :  { %2477 = vmatpush3.bf16.msra.mxu1 %v3775_v21  ;;  %4132 = vst [vmem:[#allocation29_spill] sm:$0xff] %v3790_v57  ;;  %v438_v8 = vrot.slane %v429_v60, %v4093_v44  ;;  %v4100_v44 = vsub.s32 2, %v3783_v15 }
 0x18e   :  { %2511 = vmatprep.subr.bf16.mxu1 %v3265_v4  ;;  %v434_v4 = vrot.slane %v429_v60, %v3790_v57 }
 0x1ff   :  { %v523_v34 = vpop.f32.mrb[0].mxu1 }
 0x200   :  { %v525_v14 = vpop.f32.mrb[1].mxu1  ;;  %v3797_v43 = vadd.f32 %v523_v34, %v434_v4  ;;  %v442_v34 = vrot.slane %v429_v60, %v4100_v44 }
 0x201   :  { %v3795_v1 = vadd.f32 %v525_v14, %v438_v8  ;;  %v446_v14 = vrot.slane %v429_v60, %v445_v56 }
 0x202   :  { %4134 = vst [vmem:[#allocation31_spill] sm:$0xff] %v3797_v43  ;;  %v886_v11 = vadd.f32 %v3406_v3, %v3797_v43 }
 0x203   :  { %4133 = vst [vmem:[#allocation30_spill] sm:$0xff] %v3795_v1  ;;  %v887_v22 = vadd.f32 %v3408_v5, %v3795_v1 }
 0x204   :  { %v1974_v6 = vmul.f32 -1.442695, %v886_v11 }
 0x205   :  { %v1975_v55 = vmul.f32 -1.442695, %v887_v22 }
 0x207   :  { %2661 = vpow2.f32 %v1975_v55 }
 0x208   :  { %2663 = vpow2.f32 %v1974_v6 }
 0x20f   :  { %v594_v33 = vpop.f32.mrb[2].mxu1 }
 0x210   :  { %v596_v21 = vpop.f32.mrb[3].mxu1  ;;  %v3807_v5 = vadd.f32 %v594_v33, %v442_v34 }
 0x211   :  { %v2662_v57 = vpop.eup %2661  ;;  %v3809_v1 = vadd.f32 %v596_v21, %v446_v14 }
 0x212   :  { %v2664_v50 = vpop.eup %2663  ;;  %v899_v8 = vadd.f32 1.0, %v2662_v57 }
 0x213   :  { %v893_v4 = vadd.f32 1.0, %v2664_v50 }
 0x214   :  { %2665 = vrcp.f32 %v899_v8 }
 0x215   :  { %2667 = vrcp.f32 %v893_v4  ;;  %v3819_v4 = vld [vmem:[%s4055_s8] sm:$0x1] }
 0x21e   :  { %v2666_v43 = vpop.eup %2665 }
 0x21f   :  { %v2668_v44 = vpop.eup %2667  ;;  %v909_v60 = vmul.f32 0.0, %v2666_v43 }
 0x22f   :  { %v881_v3 = vpop.f32.mrb[4].mxu1 }
 0x230   :  { %v888_v6 = vadd.f32 %v881_v3, %v3807_v5  ;;  %v883_v22 = vpop.f32.mrb[5].mxu1 }
 0x231   :  { %v889_v11 = vadd.f32 %v883_v22, %v3809_v1  ;;  %v4135_v22 = vmov 0.0  }
 0x232   :  { %2669 = vtanh.f32 %v888_v6 }
 0x233   :  { %v1976_v55 = vmul.f32 -1.442695, %v889_v11 }
 0x235   :  { %2671 = vpow2.f32 %v1976_v55 }
 0x23c   :  { %v2670_v56 = vpop.eup %2669 }
 0x23d   :  { %v910_v50 = vmul.f32 %v2670_v56, %v2668_v44  ;;  %v3824_v44 = vld [vmem:[%s4056_s9] sm:$0x1] }
 0x23f   :  { %v2672_v57 = vpop.eup %2671  ;;  %v3813_v33 = vadd.f32 %v910_v50, %v909_v60  ;;  %v4142_v60 = vld [vmem:[#allocation29_spill] sm:$0xff] }
 0x240   :  { %v906_v21 = vadd.f32 1.0, %v2672_v57 }
 0x241   :  { %2673 = vtanh.f32 %v3813_v33 }
 0x242   :  { %2675 = vrcp.f32 %v906_v21 }
 0x24b   :  { %v2674_v34 = vpop.eup %2673 }
 0x24c   :  { %v2676_v14 = vpop.eup %2675 }
 0x24d   :  { %v913_v8 = vmul.f32 %v2676_v14, %v2674_v34 }
 0x24f   :  { %2677 = vtanh.f32 %v913_v8 }
 0x259   :  { %v2678_v3 = vpop.eup %2677 }
 0x25a   :  { %v915_v43 = vmul.f32 %v2678_v3, %v3819_v4 }
 0x25c   :  { %v916_v6 = vadd.f32 %v915_v43, %v3824_v44 }
 0x25e   :  { %1127 = vmatmul.mubr.f32.vlgmr.msra.gmra.mrb[18].mxu0 %v916_v6  ;;  %2186 = vmatmul.mubr.f32.vlgmr.msra.gmra.mrb[8].mxu1 %v916_v6 }
 0x25f   :  { %2481 = vmatpush1.bf16.msra.mxu0 %v2948_v36  ;;  %2513 = vmatpush1.bf16.msra.mxu1 %v3279_v9  ;;  %v4136_v36 = vld [vmem:[#allocation3_spill] sm:$0xff] }
 0x260   :  { %2483 = vmatprep.subr.bf16.mxu0 %v2958_v39  ;;  %2515 = vmatprep.subr.bf16.mxu1 %v3282_v10  ;;  %v4137_v39 = vld [vmem:[#allocation4_spill] sm:$0xff] }
 0x261   :  { %1332 = vmatprep.mubr.f32.mxu0 %v4135_v22  ;;  %1403 = vmatprep.mubr.f32.mxu1 %v4135_v22 }
 0x263   :  { %2485 = vmatpush1.bf16.msra.mxu0 %v2966_v42  ;;  %2517 = vmatpush1.bf16.msra.mxu1 %v3298_v16  ;;  %v4138_v42 = vld [vmem:[#allocation5_spill] sm:$0xff] }
 0x264   :  { %2487 = vmatprep.subr.bf16.mxu0 %v2976_v45  ;;  %2519 = vmatprep.subr.bf16.mxu1 %v3302_v18  ;;  %v1058_v45 = vpop.f32.mrb[6].mxu1 }
 0x267   :  { %2489 = vmatpush1.bf16.msra.mxu0 %v2984_v48  ;;  %2521 = vmatpush1.bf16.msra.mxu1 %v3317_v23  ;;  %v2152_v48 = vpop.f32.mrb[7].mxu1 }
 0x268   :  { %2491 = vmatprep.subr.bf16.mxu0 %v2994_v51  ;;  %2523 = vmatprep.subr.bf16.mxu1 %v3320_v24  ;;  %v3888_v51 = vld [vmem:[%s4057_s12] sm:$0x7]  ;;  %s2746_s12 = smov 80  }
 0x269   :  { %v3908_v50 = vrot.slane %v3888_v51, %v4142_v60 }
 0x26b   :  { %2493 = vmatpush1.bf16.msra.mxu0 %v3015_v59  ;;  %2525 = vmatpush1.bf16.msra.mxu1 %v3335_v29  ;;  %v4139_v59 = vsub.s32 1, %v3783_v15  ;;  %v4140_v29 = vld [vmem:[#allocation31_spill] sm:$0xff] }
 0x26c   :  { %2495 = vmatprep.subr.bf16.mxu0 %v3024_v63  ;;  %2527 = vmatprep.subr.bf16.mxu1 %v3338_v30 }
 0x26d   :  { %v3893_v63 = vrot.slane %v3888_v51, %v4139_v59 }
 0x26f   :  { %2497 = vmatpush1.bf16.msra.mxu0 %v3045_v7  ;;  %2529 = vmatpush1.bf16.msra.mxu1 %v3353_v40  ;;  %v4141_v40 = vld [vmem:[#allocation30_spill] sm:$0xff] }
 0x270   :  { %2499 = vmatprep.subr.bf16.mxu0 %v3057_v12  ;;  %2531 = vmatprep.subr.bf16.mxu1 %v3356_v41 }
 0x273   :  { %2501 = vmatpush1.bf16.msra.mxu0 %v3068_v17  ;;  %2533 = vmatpush1.bf16.msra.mxu1 %v3371_v52 }
 0x274   :  { %2503 = vmatprep.subr.bf16.mxu0 %v3091_v26  ;;  %2535 = vmatprep.subr.bf16.mxu1 %v3374_v53 }
 0x277   :  { %2505 = vmatpush1.bf16.msra.mxu0 %v3103_v31  ;;  %2537 = vmatpush1.bf16.msra.mxu1 %v3389_v61 }
 0x278   :  { %2507 = vmatprep.subr.bf16.mxu0 %v3115_v38  ;;  %2539 = vmatprep.subr.bf16.mxu1 %v3392_v62 }
 0x27b   :  { %2509 = vmatpush1.bf16.msra.mxu0 %v3130_v47  ;;  %2541 = vmatpush1.bf16.msra.mxu1 %v3401_v2 }
 0x27c   :  { %2543 = vmatprep.subr.bf16.mxu0 %v3420_v13  ;;  %2562 = vmatprep.subr.bf16.mxu1 %v4128_v28 }
 0x27e   :  { %1333 = vmatmul.mubr.f32.vlgmr.msra.gmra.mrb[20].mxu0 %v913_v8  ;;  %1404 = vmatmul.mubr.f32.vlgmr.msra.gmra.mrb[10].mxu1 %v913_v8 }
 0x27f   :  { %2545 = vmatpush1.bf16.msra.mxu0 %v3431_v20  ;;  %2564 = vmatpush3.bf16.msra.mxu1 %v3433_v54 }
 0x280   :  { %2547 = vmatprep.subr.bf16.mxu0 %v3445_v27  ;;  %2565 = vmatprep.subr.bf16.mxu1 %v4128_v28 }
 0x281   :  { %1542 = vmatprep.mubr.f32.mxu0 %v4135_v22  ;;  %2208 = vmatprep.mubr.msk.f32.mxu1 %vm2744_vm6, %v4135_v22 }
 0x283   :  { %2549 = vmatpush1.bf16.msra.mxu0 %v3458_v35  ;;  %2567 = vmatpush3.bf16.msra.mxu1 %v3460_v37 }
 0x284   :  { %2551 = vmatprep.subr.bf16.mxu0 %v3473_v46  ;;  %2568 = vmatprep.subr.bf16.mxu1 %v4128_v28 }
 0x287   :  { %2553 = vmatpush1.bf16.msra.mxu0 %v3484_v58  ;;  %2570 = vmatpush3.bf16.msra.mxu1 %v3490_v0 }
 0x288   :  { %2555 = vmatprep.subr.bf16.mxu0 %v3500_v49  ;;  %2571 = vmatprep.subr.bf16.mxu1 %v4128_v28  ;;  %v1446_v49 = vrot.slane %v3813_v33, 7 }
 0x28b   :  { %2557 = vmatpush1.bf16.msra.mxu0 %v3512_v19  ;;  %2573 = vmatpush3.bf16.msra.mxu1 %v3518_v25 }
 0x28c   :  { %2559 = vmatprep.subr.bf16.mxu0 %v3528_v32  ;;  %2574 = vmatprep.subr.bf16.mxu1 %v4128_v28 }
 0x28f   :  { %2561 = vmatpush1.bf16.msra.mxu0 %v4136_v36  ;;  %2576 = vmatpush3.bf16.msra.mxu1 %v4137_v39 }
 0x290   :  { %2578 = vmatprep.subr.bf16.mxu0 %v4138_v42  ;;  %2609 = vmatprep.subr.bf16.mxu1 %v4128_v28 }
 0x331   :  { %v1128_v7 = vpop.f32.mrb[18].mxu0  ;;  %v1199_v12 = vpop.f32.mrb[8].mxu1 }
 0x332   :  { %v3895_v17 = vadd.f32 %v1199_v12, %v1058_v45  ;;  %v1130_v26 = vpop.f32.mrb[19].mxu0  ;;  %v2187_v31 = vpop.f32.mrb[9].mxu1  ;;  %v1219_v57 = vadd.f32 %v3908_v50, %v1128_v7 }
 0x333   :  { %v1220_v38 = vadd.f32 %v3893_v63, %v1130_v26  ;;  %v4143_v31 = vsub.s32 2, %v3783_v15 }
 0x334   :  { %v1977_v21 = vmul.f32 -1.442695, %v1219_v57 }
 0x335   :  { %2679 = vtanh.f32 %v1220_v38  ;;  %v1978_v43 = vmul.f32 -1.442695, %v1220_v38  ;;  %v3923_v38 = vrot.slane %v3888_v51, %v4143_v31 }
 0x33f   :  { %v2680_v47 = vpop.eup %2679 }
 0x340   :  { %1244 = vrot.lane.b32.xlu0 %v2680_v47, %s2745_s30  ;;  %v1221_v47 = vadd.f32 %v3923_v38, %v3895_v17 }
 0x351   :  { %v1334_v9 = vpop.f32.mrb[20].mxu0  ;;  %v1405_v10 = vpop.f32.mrb[10].mxu1 }
 0x352   :  { %v1414_v16 = vrot.slane %v1334_v9, 7  ;;  %v1336_v18 = vpop.f32.mrb[21].mxu0  ;;  %v1407_v23 = vpop.f32.mrb[11].mxu1  ;;  %v1416_v2 = vrot.slane %v1405_v10, 7  ;;  %v1979_v9 = vmul.f32 -1.442695, %v1221_v47 }
 0x353   :  { %v1415_v24 = vrot.slane %v1336_v18, 7  ;;  %v1417_v61 = vrot.slane %v1407_v23, 7 }
 0x354   :  { %v1422_v30 = vadd.f32 %v1414_v16, %v4140_v29  ;;  %v1424_v20 = vadd.f32 %v1416_v2, %v3807_v5  ;;  %v4149_v2 = vld [vmem:[#allocation11_spill] sm:$0xff] }
 0x355   :  { %v1423_v41 = vadd.f32 %v1415_v24, %v4141_v40  ;;  %v1425_v62 = vadd.f32 %v1417_v61, %v3809_v1  ;;  %v4147_v61 = vld [vmem:[#allocation9_spill] sm:$0xff] }
 0x356   :  { %v1980_v52 = vmul.f32 -1.442695, %v1422_v30 }
 0x357   :  { %v1981_v53 = vmul.f32 -1.442695, %v1423_v41  ;;  %v1982_v13 = vmul.f32 -1.442695, %v1425_v62  ;;  %v4144_v41 = vld [vmem:[#allocation6_spill] sm:$0xff] }
 0x358   :  { %2681 = vpow2.f32 %v1980_v52  ;;  %v4145_v52 = vld [vmem:[#allocation7_spill] sm:$0xff]  ;;  %v4148_v62 = vld [vmem:[#allocation10_spill] sm:$0xff] }
 0x359   :  { %2683 = vpow2.f32 %v1981_v53  ;;  %v4146_v53 = vld [vmem:[#allocation8_spill] sm:$0xff] }
 0x35a   :  { %2685 = vpow2.f32 %v1982_v13  ;;  %v4150_v13 = vld [vmem:[#allocation12_spill] sm:$0xff] }
 0x35b   :  { %2687 = vtanh.f32 %v1424_v20  ;;  %v4151_v20 = vld [vmem:[#allocation13_spill] sm:$0xff] }
 0x362   :  { %v2682_v54 = vpop.eup %2681 }
 0x363   :  { %v2684_v27 = vpop.eup %2683  ;;  %v1429_v35 = vadd.f32 1.0, %v2682_v54  ;;  %v4152_v54 = vld [vmem:[#allocation14_spill] sm:$0xff] }
 0x364   :  { %v1435_v37 = vadd.f32 1.0, %v2684_v27  ;;  %v2686_v46 = vpop.eup %2685  ;;  %v4153_v27 = vld [vmem:[#allocation15_spill] sm:$0xff] }
 0x365   :  { %2689 = vrcp.f32 %v1429_v35  ;;  %v2688_v58 = vpop.eup %2687  ;;  %v1442_v32 = vadd.f32 1.0, %v2686_v46  ;;  %v4154_v35 = vld [vmem:[#allocation16_spill] sm:$0xff]  ;;  %v4156_v46 = vld [vmem:[#allocation18_spill] sm:$0xff] }
 0x366   :  { %2691 = vrcp.f32 %v1435_v37  ;;  %v4155_v37 = vld [vmem:[#allocation17_spill] sm:$0xff] }
 0x367   :  { %2693 = vrcp.f32 %v1442_v32  ;;  %v4160_v32 = vld [vmem:[#allocation22_spill] sm:$0xff] }
 0x36f   :  { %v2690_v0 = vpop.eup %2689 }
 0x370   :  { %v2692_v19 = vpop.eup %2691  ;;  %v1449_v25 = vmul.f32 %v2690_v0, %v2688_v58  ;;  %v4157_v58 = vld [vmem:[#allocation19_spill] sm:$0xff]  ;;  %v1458_v0 = vrot.slane %v3819_v4, %v4142_v60  ;;  %v4163_v4 = vld [vmem:[#allocation25_spill] sm:$0xff] }
 0x371   :  { %v1448_v1 = vmul.f32 %v2692_v19, %v1446_v49  ;;  %v2694_v5 = vpop.eup %2693  ;;  %v4158_v49 = vld [vmem:[#allocation20_spill] sm:$0xff] }
 0x373   :  { %v1450_v11 = vadd.f32 %v1449_v25, %v1448_v1  ;;  %v4159_v25 = vld [vmem:[#allocation21_spill] sm:$0xff]  ;;  %v1465_v1 = vrot.slane %v3824_v44, %v4142_v60 }
 0x375   :  { %2695 = vtanh.f32 %v1450_v11  ;;  %v4161_v11 = vld [vmem:[#allocation23_spill] sm:$0xff] }
 0x376   :  { %2697 = vpow2.f32 %v1977_v21  ;;  %v4165_v21 = vld [vmem:[#allocation27_spill] sm:$0xff] }
 0x37f   :  { %v2696_v55 = vpop.eup %2695 }
 0x380   :  { %v3904_v56 = vmul.f32 %v2696_v55, %v2694_v5  ;;  %v2698_v33 = vpop.eup %2697  ;;  %v4162_v55 = vld [vmem:[#allocation24_spill] sm:$0xff] }
 0x381   :  { %v1225_v34 = vadd.f32 1.0, %v2698_v33  ;;  %v4166_v33 = vld [vmem:[#allocation28_spill] sm:$0xff] }
 0x383   :  { %2699 = vrcp.f32 %v1225_v34 }
 0x384   :  { %2701 = vpow2.f32 %v1978_v43 }
 0x38d   :  { %v2700_v14 = vpop.eup %2699 }
 0x38e   :  { %v2702_v6 = vpop.eup %2701  ;;  %v1241_v42 = vmul.f32 0.0, %v2700_v14 }
 0x38f   :  { %v1231_v36 = vadd.f32 1.0, %v2702_v6 }
 0x391   :  { %2703 = vrcp.f32 %v1231_v36 }
 0x39b   :  { %v2704_v39 = vpop.eup %2703 }
 0x39c   :  { %v1242_v48 = vmul.f32 0.0, %v2704_v39 }
 0x3b2   :  { %v1245_v8 = vpop.permute.xlu0 %1244 }
 0x3b3   :  { %v1247_v3 = vmul.f32 %v2700_v14, %v1245_v8 }
 0x3b5   :  { %1249 = vrot.lane.b32.xlu0 %v1247_v3, %s2746_s12 }
 0x427   :  { %v1250_v45 = vpop.permute.xlu0 %1249 }
 0x428   :  { %v3912_v59 = vadd.f32 %v1250_v45, %v1241_v42  ;;  %v3914_v7 = vadd.f32 %v1250_v45, %v1242_v48 }
 0x42a   :  { %2705 = vtanh.f32 %v3912_v59 }
 0x42b   :  { %2707 = vtanh.f32 %v3914_v7 }
 0x42c   :  { %2709 = vpow2.f32 %v1979_v9 }
 0x434   :  { %v2706_v12 = vpop.eup %2705 }
 0x435   :  { %1258 = vrot.lane.b32.xlu1 %v2706_v12, %s2747_s18  ;;  %v2708_v26 = vpop.eup %2707 }
 0x436   :  { %v2710_v10 = vpop.eup %2709 }
 0x437   :  { %v1238_v16 = vadd.f32 1.0, %v2710_v10 }
 0x439   :  { %1260 = vrot.lane.b32.xlu1 %v2708_v26, %s2747_s18  ;;  %2711 = vrcp.f32 %v1238_v16 }
 0x43a   :  { %2713 = vtanh.f32 %v3904_v56  ;;  %v4164_v56 = vld [vmem:[#allocation26_spill] sm:$0xff] }
 0x443   :  { %v2712_v24 = vpop.eup %2711 }
 0x444   :  { %v2714_v19 = vpop.eup %2713 }
 0x445   :  { %v1460_v5 = vmul.f32 %v2714_v19, %v1458_v0 }
 0x447   :  { %v1467_v57 = vadd.f32 %v1465_v1, %v1460_v5 }
 0x449   :  { %v1620_v34 = vrot.slane %v1467_v57, 1  ;;  %v22_v57 = vstv %s4061_s16 }
 0x44a   :  { %23 = vst [vmem:[#allocation2] sm:$0x1] %v22_v57 }
 0x4a7   :  { %v1259_v18 = vpop.permute.xlu1 %1258 }
 0x4a8   :  { %v3927_v23 = vmul.f32 %v2704_v39, %v1259_v18 }
 0x4aa   :  { %1470 = vrot.lane.b32.xlu0 %v3927_v23, %s2748_s19 }
 0x4ab   :  { %v1261_v15 = vpop.permute.xlu1 %1260 }
 0x4ac   :  { %v1263_v51 = vsel %vm1262_vm7, %v1259_v18, %v1261_v15 }
 0x4ad   :  { %v3932_v29 = vmul.f32 %v2712_v24, %v1263_v51 }
 0x4af   :  { %1472 = vrot.lane.b32.xlu1 %v3932_v29, %s2748_s19 }
 0x51c   :  { %v1471_v17 = vpop.permute.xlu0 %1470 }
 0x521   :  { %v1473_v30 = vpop.permute.xlu1 %1472 }
 0x522   :  { %v1475_v40 = vsel %vm1474_vm8, %v1471_v17, %v1473_v30  ;;  %v1988_v30 = vld [vmem:[%s4058_s13] ss:$0 sm:$0xff] }
 0x523   :  { %1983 = vmatmul.mubr.msk.f32.vlgmr.msra.gmra.mrb[22].mxu0 %vm917_vm9, %v1475_v40  ;;  %2209 = vmatmul.mubr.msk.f32.vlgmr.msra.gmra.mrb[12].mxu1 %vm917_vm9, %v1475_v40  ;;  %v1845_v40 = vld [vmem:[%s4060_s15 + $0x8] sm:$0xff] }
 0x524   :  { %2580 = vmatpush1.bf16.msra.mxu0 %v4144_v41  ;;  %2611 = vmatpush3.bf16.msra.mxu1 %v4145_v52  ;;  %v1846_v41 = vld [vmem:[%s4060_s15 + $0x10] sm:$0xff] }
 0x525   :  { %2582 = vmatprep.subr.bf16.mxu0 %v4146_v53  ;;  %2612 = vmatprep.subr.bf16.mxu1 %v4128_v28  ;;  %v1847_v53 = vld [vmem:[%s4060_s15 + $0x18] sm:$0xff] }
 0x526   :  { %1686 = vmatprep.mubr.f32.mxu0 %v4135_v22  ;;  %2243 = vmatprep.mubr.msk.f32.mxu1 %vm2744_vm6, %v4135_v22 }
 0x528   :  { %2584 = vmatpush1.bf16.msra.mxu0 %v4147_v61  ;;  %2614 = vmatpush3.bf16.msra.mxu1 %v4148_v62  ;;  %v2637_v61 = vpack.c.bf16 %v1847_v53, %v1846_v41  ;;  %v1848_v62 = vld [vmem:[%s4060_s15 + $0x20] sm:$0xff] }
 0x529   :  { %2586 = vmatprep.subr.bf16.mxu0 %v4149_v2  ;;  %2615 = vmatprep.subr.bf16.mxu1 %v4128_v28  ;;  %v1849_v2 = vld [vmem:[%s4060_s15 + $0x28] sm:$0xff] }
 0x52c   :  { %2588 = vmatpush1.bf16.msra.mxu0 %v4150_v13  ;;  %2617 = vmatpush3.bf16.msra.mxu1 %v4151_v20  ;;  %v2640_v13 = vpack.c.bf16 %v1849_v2, %v1848_v62  ;;  %v1850_v20 = vld [vmem:[%s4060_s15 + $0x30] sm:$0xff] }
 0x52d   :  { %2590 = vmatprep.subr.bf16.mxu0 %v4152_v54  ;;  %2618 = vmatprep.subr.bf16.mxu1 %v4128_v28  ;;  %v1851_v54 = vld [vmem:[%s4060_s15 + $0x38] sm:$0xff] }
 0x530   :  { %2592 = vmatpush1.bf16.msra.mxu0 %v4153_v27  ;;  %2620 = vmatpush3.bf16.msra.mxu1 %v4154_v35  ;;  %v2643_v27 = vpack.c.bf16 %v1851_v54, %v1850_v20  ;;  %v1852_v35 = vld [vmem:[%s4060_s15 + $0x40] sm:$0xff] }
 0x531   :  { %2594 = vmatprep.subr.bf16.mxu0 %v4155_v37  ;;  %2621 = vmatprep.subr.bf16.mxu1 %v4128_v28  ;;  %v1853_v37 = vld [vmem:[%s4060_s15 + $0x48] sm:$0xff] }
 0x534   :  { %2596 = vmatpush1.bf16.msra.mxu0 %v4156_v46  ;;  %2623 = vmatpush3.bf16.msra.mxu1 %v4157_v58  ;;  %v2646_v46 = vpack.c.bf16 %v1853_v37, %v1852_v35 }
 0x535   :  { %2598 = vmatprep.subr.bf16.mxu0 %v4158_v49  ;;  %2624 = vmatprep.subr.bf16.mxu1 %v4128_v28 }
 0x538   :  { %2600 = vmatpush1.bf16.msra.mxu0 %v4159_v25  ;;  %2626 = vmatpush3.bf16.msra.mxu1 %v4160_v32 }
 0x539   :  { %2602 = vmatprep.subr.bf16.mxu0 %v4161_v11  ;;  %2627 = vmatprep.subr.bf16.mxu1 %v4128_v28 }
 0x53c   :  { %2604 = vmatpush1.bf16.msra.mxu0 %v4162_v55  ;;  %2629 = vmatpush3.bf16.msra.mxu1 %v4163_v4 }
 0x53d   :  { %2606 = vmatprep.subr.bf16.mxu0 %v4164_v56  ;;  %2630 = vmatprep.subr.bf16.mxu1 %v4128_v28 }
 0x540   :  { %2608 = vmatpush1.bf16.msra.mxu0 %v4165_v21  ;;  %2632 = vmatpush3.bf16.msra.mxu1 %v4166_v33 }
 0x541   :  { %2633 = vmatprep.subr.bf16.mxu0 %v4128_v28 }
 0x543   :  { %1687 = vmatmul.mubr.f32.vlgmr.msra.gmra.mrb[22].mxu0 %v1620_v34  ;;  %2244 = vmatmul.mubr.f32.vlgmr.msra.gmra.mrb[14].mxu1 %v1620_v34 }
 0x544   :  { %2266 = vmatprep.mubr.msk.f32.mxu0 %vm2744_vm6, %v4135_v22 }
 0x5f6   :  { %v1615_v44 = vpop.f32.mrb[12].mxu1 }
 0x5f7   :  { %v2210_v60 = vpop.f32.mrb[13].mxu1 }
 0x616   :  { %v1688_v14 = vpop.f32.mrb[22].mxu0  ;;  %v1759_v8 = vpop.f32.mrb[14].mxu1 }
 0x617   :  { %v3980_v3 = vadd.f32 %v1759_v8, %v1615_v44  ;;  %v1690_v43 = vpop.f32.mrb[23].mxu0  ;;  %v2245_v6 = vpop.f32.mrb[15].mxu1  ;;  %v1763_v42 = vadd.f32 %v1688_v14, %v3908_v50 }
 0x618   :  { %v1764_v36 = vadd.f32 %v1690_v43, %v3893_v63  ;;  %v1990_v6 = vld [vmem:[#allocation2] ss:$0 sm:$0xff] }
 0x619   :  { %v1985_v45 = vmul.f32 -1.442695, %v1763_v42  ;;  %v1765_v58 = vadd.f32 %v3980_v3, %v3923_v38 }
 0x61a   :  { %2715 = vtanh.f32 %v1764_v36  ;;  %v1986_v47 = vmul.f32 -1.442695, %v1764_v36 }
 0x61b   :  { %2717 = vpow2.f32 %v1985_v45  ;;  %v1987_v0 = vmul.f32 -1.442695, %v1765_v58 }
 0x624   :  { %v2716_v39 = vpop.eup %2715 }
 0x625   :  { %1788 = vrot.lane.b32.xlu0 %v2716_v39, %s2745_s30  ;;  %v2718_v48 = vpop.eup %2717 }
 0x626   :  { %v1769_v22 = vadd.f32 1.0, %v2718_v48 }
 0x628   :  { %2719 = vrcp.f32 %v1769_v22 }
 0x629   :  { %2721 = vpow2.f32 %v1986_v47 }
 0x632   :  { %v2720_v12 = vpop.eup %2719 }
 0x633   :  { %v2722_v9 = vpop.eup %2721  ;;  %v1785_v16 = vmul.f32 %v2720_v12, %v3912_v59  ;;  %v1989_v59 = vld [vmem:[%s4059_s14] ss:$0 sm:$0xff] }
 0x634   :  { %v1775_v63 = vadd.f32 1.0, %v2722_v9 }
 0x636   :  { %2723 = vrcp.f32 %v1775_v63 }
 0x640   :  { %v2724_v10 = vpop.eup %2723 }
 0x641   :  { %v1786_v50 = vmul.f32 %v2724_v10, %v3914_v7  ;;  %v1844_v7 = vld [vmem:[%s4060_s15] sm:$0xff] }
 0x642   :  { %v2634_v52 = vpack.c.bf16 %v1845_v40, %v1844_v7 }
 0x644   :  { %2635 = vmatpush3.bf16.msra.mxu0 %v2634_v52 }
 0x645   :  { %2636 = vmatprep.subr.bf16.mxu0 %v4128_v28 }
 0x648   :  { %2638 = vmatpush3.bf16.msra.mxu0 %v2637_v61 }
 0x649   :  { %2639 = vmatprep.subr.bf16.mxu0 %v4128_v28 }
 0x64c   :  { %2641 = vmatpush3.bf16.msra.mxu0 %v2640_v13 }
 0x64d   :  { %2642 = vmatprep.subr.bf16.mxu0 %v4128_v28 }
 0x650   :  { %2644 = vmatpush3.bf16.msra.mxu0 %v2643_v27 }
 0x651   :  { %2645 = vmatprep.subr.bf16.mxu0 %v4128_v28 }
 0x654   :  { %2647 = vmatpush3.bf16.msra.mxu0 %v2646_v46 }
 0x697   :  { %v1789_v26 = vpop.permute.xlu0 %1788 }
 0x698   :  { %v1791_v31 = vmul.f32 %v2720_v12, %v1789_v26 }
 0x69a   :  { %1793 = vrot.lane.b32.xlu1 %v1791_v31, %s2746_s12 }
 0x70c   :  { %v1794_v18 = vpop.permute.xlu1 %1793 }
 0x70d   :  { %v1796_v15 = vadd.f32 %v1794_v18, %v1785_v16  ;;  %v1797_v24 = vadd.f32 %v1794_v18, %v1786_v50 }
 0x70f   :  { %2725 = vtanh.f32 %v1796_v15 }
 0x710   :  { %2727 = vtanh.f32 %v1797_v24 }
 0x711   :  { %2729 = vpow2.f32 %v1987_v0 }
 0x719   :  { %v2726_v51 = vpop.eup %2725 }
 0x71a   :  { %v2728_v17 = vpop.eup %2727  ;;  %1802 = vrot.lane.b32.xlu0 %v2726_v51, %s2747_s18 }
 0x71b   :  { %1804 = vrot.lane.b32.xlu1 %v2728_v17, %s2747_s18  ;;  %v2730_v49 = vpop.eup %2729 }
 0x71c   :  { %v1782_v19 = vadd.f32 1.0, %v2730_v49 }
 0x71e   :  { %1828 = vrot.lane.b32.xlu0 %v1988_v30, %s2749_s2  ;;  %2731 = vrcp.f32 %v1782_v19 }
 0x71f   :  { %1839 = vrot.lane.b32.xlu1 %v1989_v59, %s2749_s2 }
 0x728   :  { %v2732_v11 = vpop.eup %2731 }
 0x78c   :  { %v1803_v25 = vpop.permute.xlu0 %1802 }
 0x78d   :  { %v1809_v32 = vmul.f32 %v2724_v10, %v1803_v25  ;;  %v1805_v1 = vpop.permute.xlu1 %1804 }
 0x78e   :  { %v1806_v5 = vsel %vm1262_vm7, %v1803_v25, %v1805_v1 }
 0x78f   :  { %v1813_v55 = vrot.slane %v1809_v32, 7  ;;  %v1810_v4 = vmul.f32 %v2732_v11, %v1806_v5 }
 0x790   :  { %v1829_v21 = vpop.permute.xlu0 %1828 }
 0x791   :  { %v1818_v28 = vsel %vm1817_vm10, %v3927_v23, %v1813_v55  ;;  %v1814_v56 = vrot.slane %v1810_v4, 7  ;;  %v1840_v34 = vpop.permute.xlu1 %1839 }
 0x792   :  { %2733 = vtanh.f32 %v1818_v28 }
 0x793   :  { %v1819_v38 = vsel %vm1817_vm10, %v3932_v29, %v1814_v56 }
 0x794   :  { %2735 = vtanh.f32 %v1819_v38 }
 0x79c   :  { %v2734_v33 = vpop.eup %2733 }
 0x79d   :  { %v1831_v44 = vmul.f32 %v2734_v33, %v1829_v21 }
 0x79e   :  { %v2736_v60 = vpop.eup %2735 }
 0x79f   :  { %v1832_v14 = vmul.f32 %v2736_v60, %v1829_v21  ;;  %v1842_v8 = vadd.f32 %v1840_v34, %v1831_v44 }
 0x7a1   :  { %v1843_v3 = vadd.f32 %v1840_v34, %v1832_v14  ;;  %1863 = vrot.lane.b32.xlu0 %v1842_v8, %s2748_s19 }
 0x7a3   :  { %1865 = vrot.lane.b32.xlu1 %v1843_v3, %s2748_s19 }
 0x813   :  { %v1864_v23 = vpop.permute.xlu0 %1863 }
 0x815   :  { %v1866_v29 = vpop.permute.xlu1 %1865 }
 0x816   :  { %v1867_v43 = vsel %vm1474_vm8, %v1864_v23, %v1866_v29 }
 0x817   :  { %2267 = vmatmul.mubr.msk.f32.vlgmr.msra.gmra.mrb[24].mxu0 %vm917_vm9, %v1867_v43 }
 0x8ea   :  { %v1936_v36 = vpop.f32.mrb[24].mxu0 }
 0x8eb   :  { %v1937_v39 = vadd.f32 %v1990_v6, %v1936_v36  ;;  %v2268_v42 = vpop.f32.mrb[25].mxu0 }
 0x8ed   :  { %v1992_v45 = vmul.f32 -1.442695, %v1937_v39 }
 0x8ef   :  { %2737 = vpow2.f32 %v1992_v45 }
 0x8f9   :  { %v2738_v48 = vpop.eup %2737 }
 0x8fa   :  { %v1943_v22 = vadd.f32 1.0, %v2738_v48 }
 0x8fc   :  { %2739 = vrcp.f32 %v1943_v22 }
 0x906   :  { %v2740_v12 = vpop.eup %2739 }
 0x907   :  { %1947 = vst.msk [vmem:[%s4062_s17] sm:$0x3] %vm1946_vm11, %v2740_v12 }

</bundles_post_ra>
